<compile_context>
chip_gen: v6e
topology: v6e:2x2x1
jax: 0.10.0
libtpu: 0.0.40
codegen_flags: <defaults>
</compile_context>

<pallas_src>
import functools
import math

import jax
import jax.numpy as jnp
import numpy as np
from jax import lax
from jax.experimental import pallas as pl
from jax.experimental.pallas import tpu as pltpu


def spatial_attention_kernel(x_ref, wqkv_ref, wproj_ref, bproj_ref, o_ref,
                             acc_ref, *, scale):
    """One (batch, head) pair per grid step.

    x_ref:     (1, N, C)        input tokens of this batch element
    wqkv_ref:  (3, 1, C, hd)    this head's q/k/v projection slices
    wproj_ref: (1, hd, C)       this head's rows of the output projection
    bproj_ref: (1, C)           output projection bias
    o_ref:     (1, N, C)        output tokens (stored on the last head)
    acc_ref:   (N, C) f32 VMEM  accumulator for the output projection
    """
    h = pl.program_id(1)
    num_heads = pl.num_programs(1)

    x = x_ref[0]                                                        # (N, C)

    # Per-head projections: MXU operands in input dtype, f32 accumulation.
    q = jnp.dot(x, wqkv_ref[0, 0], preferred_element_type=jnp.float32)  # (N, hd)
    k = jnp.dot(x, wqkv_ref[1, 0], preferred_element_type=jnp.float32)
    v = jnp.dot(x, wqkv_ref[2, 0], preferred_element_type=jnp.float32)

    # Fold the softmax scale into q (N*hd VPU mults instead of N*N).
    q = (q * scale).astype(x.dtype)
    k = k.astype(x.dtype)
    v = v.astype(x.dtype)

    # Scores: contract last dims of q and k directly (no k.T relayout).
    s = lax.dot_general(q, k, (((1,), (1,)), ((), ())),
                        preferred_element_type=jnp.float32)             # (N, N)

    # Softmax in f32; denominator divide on the EUP.
    s = s - jnp.max(s, axis=-1, keepdims=True)
    p = jnp.exp(s)
    p = p * pl.reciprocal(jnp.sum(p, axis=-1, keepdims=True), approx=True)
    # attn_drop: p=0.0 -> identity

    ctx = jnp.dot(p.astype(x.dtype), v, preferred_element_type=jnp.float32)  # (N, hd)

    # This head's partial output projection: (N, hd) @ (hd, C).
    partial = jnp.dot(ctx.astype(x.dtype), wproj_ref[0],
                      preferred_element_type=jnp.float32)               # (N, C)

    @pl.when(h == 0)
    def _():
        acc_ref[...] = jnp.zeros_like(acc_ref)

    acc_ref[...] += partial

    @pl.when(h == num_heads - 1)
    def _():
        out = acc_ref[...] + bproj_ref[...].astype(jnp.float32)
        # proj_drop: p=0.0 -> identity
        o_ref[0] = out.astype(o_ref.dtype)


def spatial_attention(x, wqkv, wproj, bproj, *, num_heads, qk_scale=None):
    B, N, C = x.shape
    head_dim = C // num_heads
    scale = qk_scale if qk_scale is not None else head_dim ** (-0.5)

    # Split the fused (C, 3C) qkv weight into per-head slices: (3, H, C, hd).
    # Column ordering matches the PyTorch reshape(B, N, 3, H, hd).
    wqkv_heads = wqkv.reshape(C, 3, num_heads, head_dim).transpose(1, 2, 0, 3)
    # Output projection rows grouped per head: (H, hd, C).
    wproj_heads = wproj.reshape(num_heads, head_dim, C)

    kernel = functools.partial(spatial_attention_kernel, scale=scale)

    return pl.pallas_call(
        kernel,
        out_shape=jax.ShapeDtypeStruct((B, N, C), x.dtype),
        grid_spec=pltpu.PrefetchScalarGridSpec(
            num_scalar_prefetch=0,
            grid=(B, num_heads),                  # head axis innermost (reduction)
            in_specs=[
                # x: one batch row; block index constant across head steps
                # -> fetched once per batch element.
                pl.BlockSpec((1, N, C), lambda b, h: (b, 0, 0)),
                # Per-head q/k/v weight slices, streamed head by head.
                pl.BlockSpec((3, 1, C, head_dim), lambda b, h: (0, h, 0, 0)),
                # This head's rows of the output projection.
                pl.BlockSpec((1, head_dim, C), lambda b, h: (h, 0, 0)),
                # Bias (tiny, constant).
                pl.BlockSpec((1, C), lambda b, h: (0, 0)),
            ],
            out_specs=pl.BlockSpec((1, N, C), lambda b, h: (b, 0, 0)),
            scratch_shapes=[pltpu.VMEM((N, C), jnp.float32)],
        ),
        compiler_params=pltpu.CompilerParams(
            dimension_semantics=("parallel", "arbitrary")),
    )(x, wqkv_heads, wproj_heads, bproj)


def spatial_attention_ref(x, wqkv, wproj, bproj, *, num_heads):
    """Pure-JAX reference mirroring the PyTorch forward exactly."""
    B, N, C = x.shape
    hd = C // num_heads
    scale = hd ** (-0.5)
    qkv = jnp.einsum('bnc,cd->bnd', x, wqkv)
    qkv = qkv.reshape(B, N, 3, num_heads, hd).transpose(2, 0, 3, 1, 4)
    q, k, v = qkv[0], qkv[1], qkv[2]
    attn = jnp.einsum('bhnd,bhmd->bhnm', q, k) * scale
    attn = jax.nn.softmax(attn, axis=-1)
    out = jnp.einsum('bhnm,bhmd->bhnd', attn, v)
    out = out.transpose(0, 2, 1, 3).reshape(B, N, C)
    return out @ wproj + bproj


if __name__ == "__main__":
    # Small but lane-aligned shapes: C and head_dim are 128-multiples, N is a
    # multiple of 8/128, so vregs, MXU passes and stores are unmasked.
    B, N, C = 2, 128, 256
    num_heads = 2

    key = jax.random.PRNGKey(0)
    kx, kqkv, kproj, kb = jax.random.split(key, 4)

    x = jax.random.normal(kx, (B, N, C), dtype=jnp.float32)
    # Deterministic parameter init (nn.Linear-like uniform bounds), stored as (in, out).
    bound = 1.0 / math.sqrt(C)
    wqkv = jax.random.uniform(kqkv, (C, 3 * C), jnp.float32, -bound, bound)
    wproj = jax.random.uniform(kproj, (C, C), jnp.float32, -bound, bound)
    bproj = jax.random.uniform(kb, (1, C), jnp.float32, -bound, bound)

    out = spatial_attention(x, wqkv, wproj, bproj, num_heads=num_heads)
    out = jax.block_until_ready(out)

    ref = spatial_attention_ref(x, wqkv, wproj, bproj, num_heads=num_heads)
    np.testing.assert_allclose(np.asarray(out), np.asarray(ref), rtol=1e-2, atol=1e-2)

    print("KERNEL_OK")
</pallas_src>

<mosaic_0001>
module attributes {stable_mosaic.version = 11 : i64} {
  func.func @spatial_attention_kernel(%arg0: i32, %arg1: i32, %arg2: memref<1x128x256xf32, #tpu.memory_space<vmem>>, %arg3: memref<3x1x256x128xf32, #tpu.memory_space<vmem>>, %arg4: memref<1x128x256xf32, #tpu.memory_space<vmem>>, %arg5: memref<1x256xf32, #tpu.memory_space<vmem>>, %arg6: memref<1x128x256xf32, #tpu.memory_space<vmem>>, %arg7: memref<128x256xf32, #tpu.memory_space<vmem>>) attributes {dimension_semantics = [#tpu.dimension_semantics<parallel>, #tpu.dimension_semantics<arbitrary>], iteration_bounds = array<i64: 2, 2>, scalar_prefetch = 0 : i64, scratch_operands = 1 : i64, tpu.core_type = #tpu.core_type<tc>, window_params = [{transform_indices = @transform_0, window_bounds = array<i64: 1, 128, 256>}, {transform_indices = @transform_1, window_bounds = array<i64: 3, 1, 256, 128>}, {transform_indices = @transform_2, window_bounds = array<i64: 1, 128, 256>}, {pipeline_mode = #tpu.pipeline_mode<synchronous>, transform_indices = @transform_3, window_bounds = array<i64: 1, 256>}, {transform_indices = @transform_4, window_bounds = array<i64: 1, 128, 256>}]} {
    %c0 = arith.constant 0 : index
    %c0_0 = arith.constant 0 : index
    %c0_1 = arith.constant 0 : index
    %0 = vector.load %arg2[%c0, %c0_0, %c0_1] : memref<1x128x256xf32, #tpu.memory_space<vmem>>, vector<1x128x256xf32>
    %1 = vector.shape_cast %0 : vector<1x128x256xf32> to vector<128x256xf32>
    %c0_2 = arith.constant 0 : index
    %c0_3 = arith.constant 0 : index
    %c0_4 = arith.constant 0 : index
    %c0_5 = arith.constant 0 : index
    %2 = vector.load %arg3[%c0_2, %c0_3, %c0_4, %c0_5] : memref<3x1x256x128xf32, #tpu.memory_space<vmem>>, vector<1x1x256x128xf32>
    %3 = vector.shape_cast %2 : vector<1x1x256x128xf32> to vector<256x128xf32>
    %cst = arith.constant dense<0.000000e+00> : vector<128x128xf32>
    %4 = tpu.matmul %1, %3, %cst {dimension_numbers = #tpu.dot_dimension_numbers<[1], [0], [0], [1], [0, 0, 1, 1], [], []>} : vector<128x256xf32>, vector<256x128xf32>, vector<128x128xf32> -> vector<128x128xf32>
    %c1 = arith.constant 1 : index
    %c0_6 = arith.constant 0 : index
    %c0_7 = arith.constant 0 : index
    %c0_8 = arith.constant 0 : index
    %5 = vector.load %arg3[%c1, %c0_6, %c0_7, %c0_8] : memref<3x1x256x128xf32, #tpu.memory_space<vmem>>, vector<1x1x256x128xf32>
    %6 = vector.shape_cast %5 : vector<1x1x256x128xf32> to vector<256x128xf32>
    %cst_9 = arith.constant dense<0.000000e+00> : vector<128x128xf32>
    %7 = tpu.matmul %1, %6, %cst_9 {dimension_numbers = #tpu.dot_dimension_numbers<[1], [0], [0], [1], [0, 0, 1, 1], [], []>} : vector<128x256xf32>, vector<256x128xf32>, vector<128x128xf32> -> vector<128x128xf32>
    %c2 = arith.constant 2 : index
    %c0_10 = arith.constant 0 : index
    %c0_11 = arith.constant 0 : index
    %c0_12 = arith.constant 0 : index
    %8 = vector.load %arg3[%c2, %c0_10, %c0_11, %c0_12] : memref<3x1x256x128xf32, #tpu.memory_space<vmem>>, vector<1x1x256x128xf32>
    %9 = vector.shape_cast %8 : vector<1x1x256x128xf32> to vector<256x128xf32>
    %cst_13 = arith.constant dense<0.000000e+00> : vector<128x128xf32>
    %10 = tpu.matmul %1, %9, %cst_13 {dimension_numbers = #tpu.dot_dimension_numbers<[1], [0], [0], [1], [0, 0, 1, 1], [], []>} : vector<128x256xf32>, vector<256x128xf32>, vector<128x128xf32> -> vector<128x128xf32>
    %cst_14 = arith.constant 0.0883883461 : f32
    %11 = vector.broadcast %cst_14 : f32 to vector<128x128xf32>
    %12 = arith.mulf %4, %11 : vector<128x128xf32>
    %cst_15 = arith.constant dense<0.000000e+00> : vector<128x128xf32>
    %13 = tpu.matmul %12, %7, %cst_15 {dimension_numbers = #tpu.dot_dimension_numbers<[1], [1], [0], [0], [0, 0, 1, 0], [], []>} : vector<128x128xf32>, vector<128x128xf32>, vector<128x128xf32> -> vector<128x128xf32>
    %cst_16 = arith.constant dense<0xFF800000> : vector<128xf32>
    %14 = vector.multi_reduction <maximumf>, %13, %cst_16 [1] : vector<128x128xf32> to vector<128xf32>
    %15 = vector.shape_cast %14 : vector<128xf32> to vector<128x1xf32>
    %16 = vector.broadcast %15 : vector<128x1xf32> to vector<128x128xf32>
    %17 = arith.subf %13, %16 : vector<128x128xf32>
    %18 = math.exp %17 : vector<128x128xf32>
    %cst_17 = arith.constant dense<0.000000e+00> : vector<128xf32>
    %19 = vector.multi_reduction <add>, %18, %cst_17 [1] : vector<128x128xf32> to vector<128xf32>
    %20 = vector.shape_cast %19 : vector<128xf32> to vector<128x1xf32>
    %21 = tpu.reciprocal %20 {approx = true} : vector<128x1xf32> -> vector<128x1xf32>
    %22 = vector.broadcast %21 : vector<128x1xf32> to vector<128x128xf32>
    %23 = arith.mulf %18, %22 : vector<128x128xf32>
    %cst_18 = arith.constant dense<0.000000e+00> : vector<128x128xf32>
    %24 = tpu.matmul %23, %10, %cst_18 {dimension_numbers = #tpu.dot_dimension_numbers<[1], [0], [0], [1], [0, 0, 1, 1], [], []>} : vector<128x128xf32>, vector<128x128xf32>, vector<128x128xf32> -> vector<128x128xf32>
    %c0_19 = arith.constant 0 : index
    %c0_20 = arith.constant 0 : index
    %c0_21 = arith.constant 0 : index
    %25 = vector.load %arg4[%c0_19, %c0_20, %c0_21] : memref<1x128x256xf32, #tpu.memory_space<vmem>>, vector<1x128x256xf32>
    %26 = vector.shape_cast %25 : vector<1x128x256xf32> to vector<128x256xf32>
    %cst_22 = arith.constant dense<0.000000e+00> : vector<128x256xf32>
    %27 = tpu.matmul %24, %26, %cst_22 {dimension_numbers = #tpu.dot_dimension_numbers<[1], [0], [0], [1], [0, 0, 1, 1], [], []>} : vector<128x128xf32>, vector<128x256xf32>, vector<128x256xf32> -> vector<128x256xf32>
    %c0_i32 = arith.constant 0 : i32
    %28 = arith.cmpi eq, %arg1, %c0_i32 : i32
    %29 = arith.extui %28 : i1 to i32
    %c0_i32_23 = arith.constant 0 : i32
    %30 = arith.cmpi ne, %29, %c0_i32_23 : i32
    scf.if %30 {
      %cst_29 = arith.constant 0.000000e+00 : f32
      %37 = vector.broadcast %cst_29 : f32 to vector<128x256xf32>
      %c0_30 = arith.constant 0 : index
      %c0_31 = arith.constant 0 : index
      %38 = vector.load %arg7[%c0_30, %c0_31] : memref<128x256xf32, #tpu.memory_space<vmem>>, vector<128x256xf32>
      tpu.vector_store %arg7[%c0_30, %c0_31], %37 {strides = array<i32>} : memref<128x256xf32, #tpu.memory_space<vmem>>, vector<128x256xf32>,
    } else {
    }
    %c0_24 = arith.constant 0 : index
    %c0_25 = arith.constant 0 : index
    %31 = vector.load %arg7[%c0_24, %c0_25] : memref<128x256xf32, #tpu.memory_space<vmem>>, vector<128x256xf32>
    %32 = arith.addf %31, %27 : vector<128x256xf32>
    %c0_26 = arith.constant 0 : index
    %c0_27 = arith.constant 0 : index
    %33 = vector.load %arg7[%c0_26, %c0_27] : memref<128x256xf32, #tpu.memory_space<vmem>>, vector<128x256xf32>
    tpu.vector_store %arg7[%c0_26, %c0_27], %32 {strides = array<i32>} : memref<128x256xf32, #tpu.memory_space<vmem>>, vector<128x256xf32>,
    %c1_i32 = arith.constant 1 : i32
    %34 = arith.cmpi eq, %arg1, %c1_i32 : i32
    %35 = arith.extui %34 : i1 to i32
    %c0_i32_28 = arith.constant 0 : i32
    %36 = arith.cmpi ne, %35, %c0_i32_28 : i32
    scf.if %36 {
      %c0_29 = arith.constant 0 : index
      %c0_30 = arith.constant 0 : index
      %37 = vector.load %arg7[%c0_29, %c0_30] : memref<128x256xf32, #tpu.memory_space<vmem>>, vector<128x256xf32>
      %c0_31 = arith.constant 0 : index
      %c0_32 = arith.constant 0 : index
      %38 = vector.load %arg5[%c0_31, %c0_32] : memref<1x256xf32, #tpu.memory_space<vmem>>, vector<1x256xf32>
      %39 = vector.broadcast %38 : vector<1x256xf32> to vector<128x256xf32>
      %40 = arith.addf %37, %39 : vector<128x256xf32>
      %c0_33 = arith.constant 0 : index
      %c0_34 = arith.constant 0 : index
      %c0_35 = arith.constant 0 : index
      %41 = vector.load %arg6[%c0_33, %c0_34, %c0_35] : memref<1x128x256xf32, #tpu.memory_space<vmem>>, vector<1x128x256xf32>
      %42 = vector.shape_cast %41 : vector<1x128x256xf32> to vector<128x256xf32>
      %43 = vector.shape_cast %40 : vector<128x256xf32> to vector<1x128x256xf32>
      tpu.vector_store %arg6[%c0_33, %c0_34, %c0_35], %43 {strides = array<i32>} : memref<1x128x256xf32, #tpu.memory_space<vmem>>, vector<1x128x256xf32>,
    } else {
    }
    return
  }
  func.func @transform_0(%arg0: i32, %arg1: i32) -> (i32, i32, i32) {
    %c0_i32 = arith.constant 0 : i32
    %c0_i32_0 = arith.constant 0 : i32
    %c0_i32_1 = arith.constant 0 : i32
    return %arg0, %c0_i32, %c0_i32_0 : i32, i32, i32
  }
  func.func @transform_1(%arg0: i32, %arg1: i32) -> (i32, i32, i32, i32) {
    %c0_i32 = arith.constant 0 : i32
    %c0_i32_0 = arith.constant 0 : i32
    %c0_i32_1 = arith.constant 0 : i32
    %c0_i32_2 = arith.constant 0 : i32
    return %c0_i32, %arg1, %c0_i32_0, %c0_i32_1 : i32, i32, i32, i32
  }
  func.func @transform_2(%arg0: i32, %arg1: i32) -> (i32, i32, i32) {
    %c0_i32 = arith.constant 0 : i32
    %c0_i32_0 = arith.constant 0 : i32
    %c0_i32_1 = arith.constant 0 : i32
    return %arg1, %c0_i32, %c0_i32_0 : i32, i32, i32
  }
  func.func @transform_3(%arg0: i32, %arg1: i32) -> (i32, i32) {
    %c0_i32 = arith.constant 0 : i32
    %c0_i32_0 = arith.constant 0 : i32
    %c0_i32_1 = arith.constant 0 : i32
    return %c0_i32, %c0_i32_0 : i32, i32
  }
  func.func @transform_4(%arg0: i32, %arg1: i32) -> (i32, i32, i32) {
    %c0_i32 = arith.constant 0 : i32
    %c0_i32_0 = arith.constant 0 : i32
    %c0_i32_1 = arith.constant 0 : i32
    return %arg0, %c0_i32, %c0_i32_0 : i32, i32, i32
  }
}

</mosaic_0001>

<bundles_post_ra>
// kernel: tpu_custom_call.1
= control target key start
LH: loop header
LB: loop body
LE: loop exit
PB: predicated region body
PF: predicated region fallthrough
CT: control target
= control target key end

     0   :  { %s3861_s0 = inlined_call_operand.hbm [shape: f32[2,128,256], index: 0, kind: input, shape index: {}]   ;;  %s3862_s1 = inlined_call_operand.hbm [shape: f32[3,2,256,128], index: 1, kind: input, shape index: {}]   ;;  %s3863_s2 = inlined_call_operand.hbm [shape: f32[2,128,256], index: 2, kind: input, shape index: {}]   ;;  %s3864_s3 = inlined_call_operand.vmem [shape: f32[1,256], index: 3, kind: input, shape index: {}]   ;;  %s3865_s4 = inlined_call_operand.hbm [shape: f32[2,128,256], index: 4, kind: output, shape index: {}]  }
   0x1   :  { %3880 = sst [smem:[#allocation35_spill]] %s3861_s0 }
   0x2   :  { %3881 = sst [smem:[#allocation36_spill]] %s3862_s1 }
   0x3   :  { %3882 = sst [smem:[#allocation37_spill]] %s3865_s4 }
   0x4   :  { %9 = vsyncpa [#allocation4], 0 }
   0x5   :  { %11 = vsyncpa [#allocation4 + $0x1], 0 }
   0x6   :  { %12 = vsyncpa [#allocation7], 0 }
   0x7   :  { %14 = vsyncpa [#allocation7 + $0x1], 0 }
   0x8   :  { %15 = vsyncpa [#allocation5], 0 }
   0x9   :  { %17 = vsyncpa [#allocation5 + $0x1], 0  ;;  %s2868_s15 = smov 0   ;;  %s2870_s16 = smov 0  }
   0xa   :  { %s2872_s17 = smov 0   ;;  %s2874_s18 = smov 0  }
   0xb   :  { %s2876_s19 = smov 0   ;;  %s2878_s20 = smov 0  }
   0xc   :  { %s2880_s21 = smov 0   ;;  %s2882_s22 = smov 0  }
   0xd   :  { %s2884_s23 = smov 0   ;;  %s2886_s24 = smov 0  }
   0xe   :  { %s2888_s25 = smov 0  }
   0xf LB: > { %3883 = sst [smem:[#allocation16_spill]] %s2798_s18  ;;  %s2924_s26 = sadd.s32 4294967295, %s2826_s25   ;;  %s2826_s25 = sphi %s2888_s25, %s23_s25   ;;  %s2822_s24 = sphi %s2886_s24, %s3939_s24   ;;  %s2818_s23 = sphi %s2884_s23, %s3931_s23   ;;  %s2814_s22 = sphi %s2882_s22, %s3930_s22   ;;  %s2810_s21 = sphi %s2880_s21, %s3938_s21   ;;  %s2806_s20 = sphi %s2878_s20, %s3928_s20   ;;  %s2802_s19 = sphi %s2876_s19, %s3937_s19   ;;  %s2798_s18 = sphi %s2874_s18, %s3936_s18   ;;  %s2794_s17 = sphi %s2872_s17, %s3935_s17   ;;  %s2790_s16 = sphi %s2870_s16, %s3934_s16   ;;  %s2786_s15 = sphi %s2868_s15, %s3933_s15  }
  0x10   : > { %3884 = sst [smem:[#allocation17_spill]] %s2806_s20  ;;  %s1924_s27 = sadd.s32 4294967294, %s2826_s25  }
  0x11   : > { %3885 = sst [smem:[#allocation18_spill]] %s2818_s23  ;;  %s32_s28 = sadd.s32 1, %s2818_s23 }
  0x12   : > { %3886 = sst [smem:[#allocation19_spill]] %s2822_s24  ;;  %s35_s29 = sadd.s32 1, %s2822_s24 }
  0x13   : > { %p33_p0 = scmp.ge.s32.totalorder %s32_s28, 2  ;;  %s42_s30 = sadd.s32 1, %s2806_s20 }
  0x14   : > { %p49_p1 = scmp.ne.s32.totalorder %s2806_s20, %s2802_s19  ;;  %p50_p2 = scmp.eq.s32.totalorder %s2826_s25, 0 }
  0x15   : > { %s3941_s28 = smov (%p33_p0, %s32_s28), 0  ;;  %s3943_s29 = smov (!%p33_p0, %s35_s29), %s2822_s24 }
  0x16   : > { %3887 = sst [smem:[#allocation20_spill]] %s3941_s28  ;;  %p2941_p3 = por %p50_p2, %p49_p1 }
  0x17   : > { %p3866_p4 = scmp.ne.s32.totalorder %s2802_s19, %s2798_s18  ;;  %p37_p5 = scmp.ge.s32.totalorder %s3943_s29, 2 }
  0x18   : > { %p56_p6 = scmp.eq.s32.totalorder %s2924_s26, 0  ;;  %s65_s6 = ssub.s32 %s2818_s23, %s3941_s28 }
  0x19   : > { %s68_s7 = sadd.s32 1, %s2794_s17  ;;  %s3945_s29 = smov (%p37_p5, %s3943_s29), 0 }
  0x1a   : > { %3889 = sst [smem:[#allocation21_spill]] %s3945_s29  ;;  %p2958_p7 = por %p56_p6, %p3866_p4 }
  0x1b   : > { %p66_p8 = scmp.eq.s32.totalorder %s65_s6, 0  ;;  %s39_s9 = ssub.s32 %s2822_s24, %s3945_s29 }
  0x1c   : > { %p75_p9 = scmp.ne.s32.totalorder %s2794_s17, %s2790_s16  ;;  %p40_p10 = scmp.eq.s32.totalorder %s39_s9, 0 }
  0x1d   : > { %p81_p11 = scmp.ne.s32.totalorder %s2790_s16, %s2786_s15  ;;  %p152_p0 = scmp.eq.s32.totalorder %s2924_s26, 3 }
  0x1e   : > { %s2969_s10 = scalar_select %p66_p8, %s2794_s17, %s68_s7  }
  0x1f   : > { %s2972_s11 = scalar_select %p40_p10, %s2806_s20, %s42_s30  }
  0x20   : > { %3891 = sst [smem:[#allocation22_spill]] %s2969_s10  ;;  %p2976_p12 = por %p75_p9, %p50_p2 }
  0x21   : > { %3892 = sst [smem:[#allocation23_spill]] %s2972_s11  ;;  %p2982_p13 = por %p81_p11, %p56_p6 }
  0x22   : > { %p158_p5 = scmp.eq.s32.totalorder %s1924_s27, 3  ;;  %p2990_p4 = por %p152_p0, %p49_p1 }
  0x23   : > { %p3897_p8 = scmp.ne.s32.totalorder %s2802_s19, %s2798_s18  ;;  %p1926_p2 = scmp.ge.s32.totalorder %s2826_s25, 4 }
  0x24   : > { %s3895_s14 = scalar_select %p2990_p4, 1, 0 }
  0x25   : > { %p2997_p10 = por %p158_p5, %p3897_p8  ;;  %177 = sbr.rel (%p1926_p2) target bundleno = 85 (0x55), region = 20 }
  0x26   : > { %3896 = sst [smem:[#allocation24_spill]] %s3895_s14  ;;  %s181_s30 = sand.u32 (!%p1926_p2), 1, %s2806_s20  }
  0x27   : > { %s3898_s15 = scalar_select %p2997_p10, 1, 0 }
  0x28   : > { %s2012_s6 = sshll.u32 (!%p1926_p2), %s2822_s24, 12  ;;  %s1927_s7 = sshll.u32 (!%p1926_p2), %s181_s30, 8 }
  0x29   : > { %3899 = sst [smem:[#allocation25_spill]] %s3898_s15  ;;  %s185_s28 = scalar_lea.vmem (!%p1926_p2), [#allocation3], %s1927_s7 }
  0x2a   : > { %s3900_s0 = sld [smem:[#allocation35_spill]]  ;;  %s192_s11 = sshll.u32 %s185_s28, 4  ;;  %s193_s11 = int_to_ptr.vmem [resolvable:$true] %s192_s11 }
  0x2b   : > { %s182_s10 = scalar_lea.sflag [#allocation4], %s181_s30  ;;  %s2662_s18 = scalar_lea.vmem %s193_s11, 4096 }
  0x2c   : > { %p2663_p1 = scmp.ne.s32.totalorder %s193_s11, %s2662_s18  ;;  %s2828_s15 = smov [#allocation3]  }
  0x2d   : > { %s2666_s4 = sshll.u32 %s2828_s15, 4  ;;  %s2667_s4 = int_to_ptr.vmem [resolvable:$false] %s2666_s4 }
  0x2e   : > { %p2664_p6 = pnand %p2663_p1, %p2941_p3  ;;  %s2668_s14 = scalar_lea.vmem %s2667_s4, 8192 }
  0x2f   : > { %p2669_p11 = scmp.lt.s32.totalorder %s193_s11, %s2667_s4  ;;  %p2670_p0 = scmp.lt.s32.totalorder %s2668_s14, %s2662_s18 }
  0x30   : > { %s191_s29 = scalar_lea.hbm %s3900_s0, %s2012_s6  ;;  %p2665_p9 = pneg %p2664_p6 }
  0x31   : > { %p2671_p5 = por %p2670_p0, %p2669_p11 }
  0x33   : > { %p2672_p8 = pnand %p2671_p5, %p2665_p9 }
  0x35   : > { %2675 = shalt.err (!%p2672_p8)
}
  0x36   : > { %s3874_s27 = smov 256   ;;  %s3875_s6 = smov 16  }
  0x37   : > { %2466 = dma.hbm_to_vmem [thread:$0]  (%p2941_p3), %s191_s29, 4096, %s193_s11, %s182_s10, %s3874_s27, %s3874_s27, %s3875_s6  }
  0x38   : > { %s202_s4 = sand.u32 1, %s2826_s25   ;;  %s204_s18 = sand.u32 1, %s2794_s17  }
  0x39   : > { %s2464_s28 = smul.u32 768, %s204_s18  ;;  %s2013_s14 = sshll.u32 %s2818_s23, 12 }
  0x3a   : > { %s2467_s15 = scalar_select %p2976_p12, [#allocation0], [#allocation12] }
  0x3b   : > { %s3901_s1 = sld [smem:[#allocation36_spill]]  ;;  %s2831_s29 = smov 8192  }
  0x3c   : > { %2468 = sst [smem:[#allocation11]] (%p2976_p12), %s2831_s29  ;;  %s206_s11 = scalar_lea.vmem [#allocation6], %s2464_s28 }
  0x3d   : > { %s217_s10 = sld [smem:[%s2467_s15]]   ;;  %s225_s9 = sshll.u32 %s206_s11, 4  ;;  %s226_s9 = int_to_ptr.vmem [resolvable:$true] %s225_s9 }
  0x3e   : > { %s2832_s27 = smov 4096   ;;  %s2833_s6 = smov 32  }
  0x3f   : > { %2469 = sst [smem:[#allocation11 + $0x1]] (%p2976_p12), %s2832_s27  ;;  %s2834_s0 = smov 128  }
  0x40   : > { %2470 = sst [smem:[#allocation11 + $0x2]] (%p2976_p12), %s2833_s6  ;;  %s2835_s30 = smov 8  }
  0x41   : > { %s212_s7 = scalar_lea.hbm %s3901_s1, %s2013_s14  ;;  %2471 = sst [smem:[#allocation11 + $0x3]] (%p2976_p12), %s2834_s0 }
  0x42   : > { %2472 = sst [smem:[#allocation11 + $0x4]] (%p2976_p12), %s2834_s0  ;;  %s203_s28 = scalar_lea.sflag [#allocation7], %s202_s4 }
  0x43   : > { %s1932_s5 = sshll.u32 %s217_s10, 26  ;;  %2473 = sst [smem:[#allocation11 + $0x5]] (%p2976_p12), %s2835_s30 }
  0x44   : > { %s1933_s15 = sadd.s32 134217728, %s1932_s5  ;;  %s2836_s29 = smov 131072  }
  0x45   : > { %2474 = dma.general (%p2976_p12), %s212_s7, 12288, %s226_s9, %s203_s28, %s2836_s29, [#allocation11], %s1933_s15, 0  }
  0x46   : > { %s1934_s11 = sshll.u32 %s204_s18, 8  ;;  %s258_s6 = scalar_lea.hbm %s3863_s2, %s2013_s14 }
  0x47   : > { %s252_s24 = scalar_lea.vmem [#allocation8], %s1934_s11  ;;  %s2837_s0 = smov [#allocation8]  }
  0x48   : > { %s259_s23 = sshll.u32 %s252_s24, 4  ;;  %s2692_s10 = sshll.u32 %s2837_s0, 4  ;;  %s260_s23 = int_to_ptr.vmem [resolvable:$true] %s259_s23  ;;  %s2693_s10 = int_to_ptr.vmem [resolvable:$false] %s2692_s10 }
  0x49   : > { %s2688_s20 = scalar_lea.vmem %s260_s23, 4096  ;;  %s2694_s4 = scalar_lea.vmem %s2693_s10, 8192 }
  0x4a   : > { %p2689_p3 = scmp.ne.s32.totalorder %s260_s23, %s2688_s20  ;;  %p2695_p6 = scmp.lt.s32.totalorder %s260_s23, %s2693_s10 }
  0x4b   : > { %p2696_p9 = scmp.lt.s32.totalorder %s2694_s4, %s2688_s20 }
  0x4c   : > { %p2690_p2 = pnand %p2689_p3, %p2976_p12 }
  0x4d   : > { %p2697_p11 = por %p2696_p9, %p2695_p6 }
  0x4e   : > { %p2691_p1 = pneg %p2690_p2 }
  0x50   : > { %p2698_p0 = pnand %p2697_p11, %p2691_p1 }
  0x52   : > { %2701 = shalt.err (!%p2698_p0)
}
  0x53   : > { %s3902_s1 = smov 16   ;;  %s3903_s18 = smov 256  }
  0x54   : > { %2475 = dma.hbm_to_vmem [thread:$0]  (%p2976_p12), %s258_s6, 4096, %s260_s23, %s203_s28, %s3903_s18, %s3903_s18, %s3902_s1  }
  0x55 PF: > { %p1937_p5 = scmp.ge.s32.totalorder %s2826_s25, 1  ;;  %p267_p8 = scmp.lt.s32.totalorder %s2826_s25, 5 }
  0x57   : > { %p268_p3 = pnand %p1937_p5, %p267_p8 }
  0x59   : > { %271 = sbr.rel (%p268_p3) target bundleno = 1534 (0x5fe), region = 36 }
  0x5e   : > { %s3049_s24 = sand.u32 1, %s2802_s19  }
  0x5f   : > { %s1938_s20 = sshll.u32 %s3049_s24, 8  ;;  %s274_s12 = scalar_lea.sflag [#allocation4], %s3049_s24 }
  0x60   : > { %s3055_s14 = scalar_lea.vmem [#allocation3], %s1938_s20 }
  0x61   : > { %2773 = dma.done.wait (%p2958_p7), %s274_s12, 4096  }
  0x62   : > { %2775 = vsyncadd (%p2958_p7), %s274_s12, 4294963200  ;;  %s282_s23 = sand.u32 1, %s2924_s26   ;;  %s284_s7 = sand.u32 1, %s2790_s16  }
  0x63   : > { %s2465_s9 = smul.u32 768, %s284_s7  ;;  %s283_s5 = scalar_lea.sflag [#allocation7], %s282_s23 }
  0x65   : > { %s3065_s30 = scalar_lea.vmem [#allocation6], %s2465_s9 }
  0x66   : > { %2777 = dma.done.wait (%p2982_p13), %s283_s5, 16384  }
  0x67   : > { %2779 = vsyncadd (%p2982_p13), %s283_s5, 4294950912  ;;  %v393_v0 = vld [vmem:[%s3065_s30 + $0xf8] sm:$0xff]  ;;  %v392_v2 = vld [vmem:[%s3065_s30 + $0xf0] sm:$0xff]  ;;  %s1939_s26 = sshll.u32 %s284_s7, 8  ;;  %s3685_s13 = scalar_lea.vmem [#allocation9], %s1938_s20 }
  0x68   : > { %v377_v1 = vld [vmem:[%s3065_s30 + $0x78] sm:$0xff]  ;;  %2432 = vmatprep.subr.mxu1 %v393_v0  ;;  %v376_v3 = vld [vmem:[%s3065_s30 + $0x70] sm:$0xff]  ;;  %2016 = vmatprep.subr.mxu0 %v393_v0  ;;  %v391_v4 = vld [vmem:[%s3065_s30 + $0xe8] sm:$0xff]  ;;  %s3569_s8 = scalar_lea.vmem [#allocation8], %s1939_s26  ;;  %p2005_p7 = scmp.ne.s32.totalorder %s2810_s21, 0 }
  0x69   : > { %2448 = vmatpush3.msra.mxu1 %v377_v1  ;;  %2017 = vmatpush3.msra.mxu0 %v377_v1  ;;  %v375_v5 = vld [vmem:[%s3065_s30 + $0x68] sm:$0xff]  ;;  %v390_v6 = vld [vmem:[%s3065_s30 + $0xe0] sm:$0xff]  ;;  %v389_v8 = vld [vmem:[%s3065_s30 + $0xd8] sm:$0xff] }
  0x6a   : > { %2433 = vmatprep.subr.mxu1 %v392_v2  ;;  %2018 = vmatprep.subr.mxu0 %v392_v2  ;;  %v374_v7 = vld [vmem:[%s3065_s30 + $0x60] sm:$0xff]  ;;  %v373_v9 = vld [vmem:[%s3065_s30 + $0x58] sm:$0xff]  ;;  %v388_v10 = vld [vmem:[%s3065_s30 + $0xd0] sm:$0xff] }
  0x6b   : > { %2449 = vmatpush3.msra.mxu1 %v376_v3  ;;  %2019 = vmatpush3.msra.mxu0 %v376_v3  ;;  %v372_v11 = vld [vmem:[%s3065_s30 + $0x50] sm:$0xff]  ;;  %v387_v12 = vld [vmem:[%s3065_s30 + $0xc8] sm:$0xff]  ;;  %v386_v15 = vld [vmem:[%s3065_s30 + $0xc0] sm:$0xff] }
  0x6c   : > { %2434 = vmatprep.subr.mxu1 %v391_v4  ;;  %2020 = vmatprep.subr.mxu0 %v391_v4  ;;  %v3085_v13 = vld [vmem:[%s3055_s14 + $0x88] sm:$0xff]  ;;  %v370_v16 = vld [vmem:[%s3065_s30 + $0x40] sm:$0xff]  ;;  %v385_v17 = vld [vmem:[%s3065_s30 + $0xb8] sm:$0xff] }
  0x6d   : > { %2450 = vmatpush3.msra.mxu1 %v375_v5  ;;  %2021 = vmatpush3.msra.mxu0 %v375_v5  ;;  %v371_v14 = vld [vmem:[%s3065_s30 + $0x48] sm:$0xff]  ;;  %v369_v18 = vld [vmem:[%s3065_s30 + $0x38] sm:$0xff]  ;;  %v384_v19 = vld [vmem:[%s3065_s30 + $0xb0] sm:$0xff] }
  0x6e   : > { %2435 = vmatprep.subr.mxu1 %v390_v6  ;;  %2022 = vmatprep.subr.mxu0 %v390_v6  ;;  %v368_v20 = vld [vmem:[%s3065_s30 + $0x30] sm:$0xff]  ;;  %v383_v21 = vld [vmem:[%s3065_s30 + $0xa8] sm:$0xff]  ;;  %v382_v23 = vld [vmem:[%s3065_s30 + $0xa0] sm:$0xff] }
  0x6f   : > { %2451 = vmatpush3.msra.mxu1 %v374_v7  ;;  %2023 = vmatpush3.msra.mxu0 %v374_v7  ;;  %v367_v22 = vld [vmem:[%s3065_s30 + $0x28] sm:$0xff]  ;;  %v366_v24 = vld [vmem:[%s3065_s30 + $0x20] sm:$0xff]  ;;  %v381_v25 = vld [vmem:[%s3065_s30 + $0x98] sm:$0xff] }
  0x70   : > { %2436 = vmatprep.subr.mxu1 %v389_v8  ;;  %2024 = vmatprep.subr.mxu0 %v389_v8  ;;  %v365_v26 = vld [vmem:[%s3065_s30 + $0x18] sm:$0xff]  ;;  %v380_v27 = vld [vmem:[%s3065_s30 + $0x90] sm:$0xff]  ;;  %v379_v29 = vld [vmem:[%s3065_s30 + $0x88] sm:$0xff] }
  0x71   : > { %2452 = vmatpush3.msra.mxu1 %v373_v9  ;;  %2025 = vmatpush3.msra.mxu0 %v373_v9  ;;  %v364_v28 = vld [vmem:[%s3065_s30 + $0x10] sm:$0xff]  ;;  %v363_v30 = vld [vmem:[%s3065_s30 + $0x8] sm:$0xff]  ;;  %v378_v31 = vld [vmem:[%s3065_s30 + $0x80] sm:$0xff] }
  0x72   : > { %2437 = vmatprep.subr.mxu1 %v388_v10  ;;  %498 = vmatprep.mubr.f32.mxu1 %v3085_v13  ;;  %v362_v32 = vld [vmem:[%s3065_s30] sm:$0xff]  ;;  %v1972_v34 = vld [vmem:[%s3065_s30 + $0x1f8] sm:$0xff]  ;;  %v1971_v37 = vld [vmem:[%s3065_s30 + $0x1f0] sm:$0xff] }
  0x73   : > { %2453 = vmatpush3.msra.mxu1 %v372_v11  ;;  %2026 = vmatprep.subr.mxu0 %v388_v10  ;;  %v3108_v33 = vld [vmem:[%s3055_s14 + $0x80] sm:$0xff]  ;;  %v1956_v35 = vld [vmem:[%s3065_s30 + $0x178] sm:$0xff]  ;;  %v1955_v38 = vld [vmem:[%s3065_s30 + $0x170] sm:$0xff] }
  0x74   : > { %2438 = vmatprep.subr.mxu1 %v387_v12  ;;  %2027 = vmatpush3.msra.mxu0 %v372_v11  ;;  %v3113_v36 = vld [vmem:[%s3055_s14 + $0x98] sm:$0xff]  ;;  %v3120_v39 = vld [vmem:[%s3055_s14 + $0x90] sm:$0xff]  ;;  %v1970_v40 = vld [vmem:[%s3065_s30 + $0x1e8] sm:$0xff] }
  0x75   : > { %2454 = vmatpush3.msra.mxu1 %v371_v14  ;;  %2028 = vmatprep.subr.mxu0 %v387_v12  ;;  %v1954_v41 = vld [vmem:[%s3065_s30 + $0x168] sm:$0xff]  ;;  %v1969_v44 = vld [vmem:[%s3065_s30 + $0x1e0] sm:$0xff]  ;;  %v1968_v47 = vld [vmem:[%s3065_s30 + $0x1d8] sm:$0xff] }
  0x76   : > { %2439 = vmatprep.subr.mxu1 %v386_v15  ;;  %2029 = vmatpush3.msra.mxu0 %v371_v14  ;;  %v3125_v42 = vld [vmem:[%s3055_s14 + $0xa8] sm:$0xff]  ;;  %v1953_v45 = vld [vmem:[%s3065_s30 + $0x160] sm:$0xff]  ;;  %v1952_v49 = vld [vmem:[%s3065_s30 + $0x158] sm:$0xff] }
  0x77   : > { %2455 = vmatpush3.msra.mxu1 %v370_v16  ;;  %2030 = vmatprep.subr.mxu0 %v386_v15  ;;  %v3128_v43 = vld [vmem:[%s3055_s14 + $0x8] sm:$0xff]  ;;  %v3136_v46 = vld [vmem:[%s3055_s14 + $0xa0] sm:$0xff]  ;;  %v3144_v50 = vld [vmem:[%s3055_s14 + $0xb8] sm:$0xff] }
  0x78   : > { %2440 = vmatprep.subr.mxu1 %v385_v17  ;;  %2031 = vmatpush3.msra.mxu0 %v370_v16  ;;  %v3140_v48 = vld [vmem:[%s3055_s14] sm:$0xff]  ;;  %v3147_v51 = vld [vmem:[%s3055_s14 + $0x18] sm:$0xff]  ;;  %v1967_v52 = vld [vmem:[%s3065_s30 + $0x1d0] sm:$0xff] }
  0x79   : > { %2456 = vmatpush3.msra.mxu1 %v369_v18  ;;  %2032 = vmatprep.subr.mxu0 %v385_v17  ;;  %v1951_v53 = vld [vmem:[%s3065_s30 + $0x150] sm:$0xff]  ;;  %v1966_v55 = vld [vmem:[%s3065_s30 + $0x1c8] sm:$0xff]  ;;  %v1965_v60 = vld [vmem:[%s3065_s30 + $0x1c0] sm:$0xff] }
  0x7a   : > { %2441 = vmatprep.subr.mxu1 %v384_v19  ;;  %2033 = vmatpush3.msra.mxu0 %v369_v18  ;;  %v3156_v54 = vld [vmem:[%s3055_s14 + $0xb0] sm:$0xff]  ;;  %v1950_v57 = vld [vmem:[%s3065_s30 + $0x148] sm:$0xff]  ;;  %v1949_v61 = vld [vmem:[%s3065_s30 + $0x140] sm:$0xff] }
  0x7b   : > { %2457 = vmatpush3.msra.mxu1 %v368_v20  ;;  %2034 = vmatprep.subr.mxu0 %v384_v19  ;;  %v3160_v56 = vld [vmem:[%s3055_s14 + $0x10] sm:$0xff]  ;;  %v3164_v58 = vld [vmem:[%s3055_s14 + $0xc8] sm:$0xff]  ;;  %v3176_v62 = vld [vmem:[%s3055_s14 + $0xc0] sm:$0xff] }
  0x7c   : > { %2442 = vmatprep.subr.mxu1 %v383_v21  ;;  %2035 = vmatpush3.msra.mxu0 %v368_v20  ;;  %v3167_v59 = vld [vmem:[%s3055_s14 + $0x28] sm:$0xff]  ;;  %v1964_v63 = vld [vmem:[%s3065_s30 + $0x1b8] sm:$0xff]  ;;  %v3180_v0 = vld [vmem:[%s3055_s14 + $0x20] sm:$0xff] }
  0x7d   : > { %2458 = vmatpush3.msra.mxu1 %v367_v22  ;;  %2036 = vmatprep.subr.mxu0 %v383_v21  ;;  %v1948_v1 = vld [vmem:[%s3065_s30 + $0x138] sm:$0xff]  ;;  %v1963_v4 = vld [vmem:[%s3065_s30 + $0x1b0] sm:$0xff]  ;;  %v1962_v7 = vld [vmem:[%s3065_s30 + $0x1a8] sm:$0xff] }
  0x7e   : > { %2443 = vmatprep.subr.mxu1 %v382_v23  ;;  %2037 = vmatpush3.msra.mxu0 %v367_v22  ;;  %v3184_v2 = vld [vmem:[%s3055_s14 + $0xd8] sm:$0xff]  ;;  %v1947_v5 = vld [vmem:[%s3065_s30 + $0x130] sm:$0xff]  ;;  %v1946_v9 = vld [vmem:[%s3065_s30 + $0x128] sm:$0xff] }
  0x7f   : > { %2459 = vmatpush3.msra.mxu1 %v366_v24  ;;  %2038 = vmatprep.subr.mxu0 %v382_v23  ;;  %v3187_v3 = vld [vmem:[%s3055_s14 + $0x38] sm:$0xff]  ;;  %v3196_v6 = vld [vmem:[%s3055_s14 + $0xd0] sm:$0xff]  ;;  %v3204_v10 = vld [vmem:[%s3055_s14 + $0xe8] sm:$0xff] }
  0x80   : > { %2444 = vmatprep.subr.mxu1 %v381_v25  ;;  %2039 = vmatpush3.msra.mxu0 %v366_v24  ;;  %v3200_v8 = vld [vmem:[%s3055_s14 + $0x30] sm:$0xff]  ;;  %v3207_v11 = vld [vmem:[%s3055_s14 + $0x48] sm:$0xff]  ;;  %v1961_v12 = vld [vmem:[%s3065_s30 + $0x1a0] sm:$0xff] }
  0x81   : > { %2460 = vmatpush3.msra.mxu1 %v365_v26  ;;  %2040 = vmatprep.subr.mxu0 %v381_v25  ;;  %v1945_v14 = vld [vmem:[%s3065_s30 + $0x120] sm:$0xff]  ;;  %v1960_v16 = vld [vmem:[%s3065_s30 + $0x198] sm:$0xff]  ;;  %v1959_v21 = vld [vmem:[%s3065_s30 + $0x190] sm:$0xff] }
  0x82   : > { %2445 = vmatprep.subr.mxu1 %v380_v27  ;;  %2041 = vmatpush3.msra.mxu0 %v365_v26  ;;  %v3216_v15 = vld [vmem:[%s3055_s14 + $0xe0] sm:$0xff]  ;;  %v1944_v18 = vld [vmem:[%s3065_s30 + $0x118] sm:$0xff]  ;;  %v1943_v22 = vld [vmem:[%s3065_s30 + $0x110] sm:$0xff] }
  0x83   : > { %2461 = vmatpush3.msra.mxu1 %v364_v28  ;;  %2042 = vmatprep.subr.mxu0 %v380_v27  ;;  %v3220_v17 = vld [vmem:[%s3055_s14 + $0x40] sm:$0xff]  ;;  %v3224_v19 = vld [vmem:[%s3055_s14 + $0xf8] sm:$0xff]  ;;  %v3236_v23 = vld [vmem:[%s3055_s14 + $0xf0] sm:$0xff] }
  0x84   : > { %2446 = vmatprep.subr.mxu1 %v379_v29  ;;  %2043 = vmatpush3.msra.mxu0 %v364_v28  ;;  %v3227_v20 = vld [vmem:[%s3055_s14 + $0x58] sm:$0xff]  ;;  %v1958_v24 = vld [vmem:[%s3065_s30 + $0x188] sm:$0xff]  ;;  %v3240_v25 = vld [vmem:[%s3055_s14 + $0x50] sm:$0xff] }
  0x85   : > { %2462 = vmatpush3.msra.mxu1 %v363_v30  ;;  %2044 = vmatprep.subr.mxu0 %v379_v29  ;;  %v1942_v26 = vld [vmem:[%s3065_s30 + $0x108] sm:$0xff]  ;;  %v1957_v28 = vld [vmem:[%s3065_s30 + $0x180] sm:$0xff] }
  0x86   : > { %2447 = vmatprep.subr.mxu1 %v378_v31  ;;  %2045 = vmatpush3.msra.mxu0 %v363_v30  ;;  %v3244_v27 = vld [vmem:[%s3055_s14 + $0x68] sm:$0xff]  ;;  %v1941_v29 = vld [vmem:[%s3065_s30 + $0x100] sm:$0xff] }
  0x87   : > { %2463 = vmatpush3.msra.mxu1 %v362_v32  ;;  %2046 = vmatprep.subr.mxu0 %v378_v31  ;;  %v3253_v30 = vld [vmem:[%s3055_s14 + $0x60] sm:$0xff]  ;;  %v3256_v31 = vld [vmem:[%s3055_s14 + $0x78] sm:$0xff] }
  0x88   : > { %499 = vmatmul.mubr.f32.vlgmr.msra.gmra.mxu1 %v3108_v33  ;;  %2096 = vmatprep.subr.mxu1 %v1972_v34 }
  0x89   : > { %2097 = vmatpush3.msra.mxu1 %v1956_v35  ;;  %503 = vmatprep.mubr.f32.mxu1 %v3113_v36 }
  0x8a   : > { %2098 = vmatprep.subr.mxu1 %v1971_v37  ;;  %2047 = vmatpush3.msra.mxu0 %v362_v32  ;;  %v3263_v32 = vld [vmem:[%s3055_s14 + $0x70] sm:$0xff] }
  0x8b   : > { %2099 = vmatpush3.msra.mxu1 %v1955_v38  ;;  %458 = vmatprep.mubr.f32.mxu0 %v3128_v43 }
  0x8c   : > { %504 = vmatmul.mubr.f32.gmra.mxu1 %v3120_v39  ;;  %2100 = vmatprep.subr.mxu1 %v1970_v40 }
  0x8d   : > { %2101 = vmatpush3.msra.mxu1 %v1954_v41  ;;  %508 = vmatprep.mubr.f32.mxu1 %v3125_v42 }
  0x8e   : > { %2102 = vmatprep.subr.mxu1 %v1969_v44  ;;  %459 = vmatmul.mubr.f32.vlgmr.msra.gmra.mxu0 %v3140_v48 }
  0x8f   : > { %2103 = vmatpush3.msra.mxu1 %v1953_v45  ;;  %463 = vmatprep.mubr.f32.mxu0 %v3147_v51 }
  0x90   : > { %509 = vmatmul.mubr.f32.gmra.mxu1 %v3136_v46  ;;  %2104 = vmatprep.subr.mxu1 %v1968_v47 }
  0x91   : > { %2105 = vmatpush3.msra.mxu1 %v1952_v49  ;;  %513 = vmatprep.mubr.f32.mxu1 %v3144_v50 }
  0x92   : > { %2106 = vmatprep.subr.mxu1 %v1967_v52  ;;  %464 = vmatmul.mubr.f32.gmra.mxu0 %v3160_v56 }
  0x93   : > { %2107 = vmatpush3.msra.mxu1 %v1951_v53  ;;  %468 = vmatprep.mubr.f32.mxu0 %v3167_v59 }
  0x94   : > { %514 = vmatmul.mubr.f32.gmra.mxu1 %v3156_v54  ;;  %2108 = vmatprep.subr.mxu1 %v1966_v55 }
  0x95   : > { %2109 = vmatpush3.msra.mxu1 %v1950_v57  ;;  %518 = vmatprep.mubr.f32.mxu1 %v3164_v58 }
  0x96   : > { %2110 = vmatprep.subr.mxu1 %v1965_v60  ;;  %469 = vmatmul.mubr.f32.gmra.mxu0 %v3180_v0 }
  0x97   : > { %2111 = vmatpush3.msra.mxu1 %v1949_v61  ;;  %473 = vmatprep.mubr.f32.mxu0 %v3187_v3 }
  0x98   : > { %519 = vmatmul.mubr.f32.gmra.mxu1 %v3176_v62  ;;  %2112 = vmatprep.subr.mxu1 %v1964_v63 }
  0x99   : > { %2113 = vmatpush3.msra.mxu1 %v1948_v1  ;;  %523 = vmatprep.mubr.f32.mxu1 %v3184_v2 }
  0x9a   : > { %2114 = vmatprep.subr.mxu1 %v1963_v4  ;;  %474 = vmatmul.mubr.f32.gmra.mxu0 %v3200_v8 }
  0x9b   : > { %2115 = vmatpush3.msra.mxu1 %v1947_v5  ;;  %478 = vmatprep.mubr.f32.mxu0 %v3207_v11 }
  0x9c   : > { %524 = vmatmul.mubr.f32.gmra.mxu1 %v3196_v6  ;;  %2116 = vmatprep.subr.mxu1 %v1962_v7 }
  0x9d   : > { %2117 = vmatpush3.msra.mxu1 %v1946_v9  ;;  %528 = vmatprep.mubr.f32.mxu1 %v3204_v10 }
  0x9e   : > { %2118 = vmatprep.subr.mxu1 %v1961_v12  ;;  %479 = vmatmul.mubr.f32.gmra.mxu0 %v3220_v17 }
  0x9f   : > { %2119 = vmatpush3.msra.mxu1 %v1945_v14  ;;  %483 = vmatprep.mubr.f32.mxu0 %v3227_v20 }
  0xa0   : > { %529 = vmatmul.mubr.f32.gmra.mxu1 %v3216_v15  ;;  %2120 = vmatprep.subr.mxu1 %v1960_v16 }
  0xa1   : > { %2121 = vmatpush3.msra.mxu1 %v1944_v18  ;;  %533 = vmatprep.mubr.f32.mxu1 %v3224_v19 }
  0xa2   : > { %2122 = vmatprep.subr.mxu1 %v1959_v21  ;;  %484 = vmatmul.mubr.f32.gmra.mxu0 %v3240_v25 }
  0xa3   : > { %2123 = vmatpush3.msra.mxu1 %v1943_v22  ;;  %488 = vmatprep.mubr.f32.mxu0 %v3244_v27 }
  0xa4   : > { %534 = vmatmul.mubr.f32.gmra.mxu1 %v3236_v23  ;;  %2124 = vmatprep.subr.mxu1 %v1958_v24 }
  0xa5   : > { %2125 = vmatpush3.msra.mxu1 %v1942_v26  ;;  %636 = vmatprep.mubr.f32.mxu1 %v3128_v43 }
  0xa6   : > { %2126 = vmatprep.subr.mxu1 %v1957_v28  ;;  %489 = vmatmul.mubr.f32.gmra.mxu0 %v3253_v30 }
  0xa7   : > { %2127 = vmatpush3.msra.mxu1 %v1941_v29  ;;  %493 = vmatprep.mubr.f32.mxu0 %v3256_v31 }
  0xa8   : > { %637 = vmatmul.mubr.f32.vlgmr.msra.gmra.mxu1 %v3140_v48 }
  0xa9   : > { %641 = vmatprep.mubr.f32.mxu1 %v3147_v51 }
  0xaa   : > { %494 = vmatmul.mubr.f32.gmra.mxu0 %v3263_v32 }
  0xab   : > { %814 = vmatprep.mubr.f32.mxu0 %v3128_v43 }
  0xac   : > { %642 = vmatmul.mubr.f32.gmra.mxu1 %v3160_v56 }
  0xad   : > { %646 = vmatprep.mubr.f32.mxu1 %v3167_v59 }
  0xb0   : > { %647 = vmatmul.mubr.f32.gmra.mxu1 %v3180_v0 }
  0xb1   : > { %651 = vmatprep.mubr.f32.mxu1 %v3187_v3 }
  0xb4   : > { %652 = vmatmul.mubr.f32.gmra.mxu1 %v3200_v8 }
  0xb5   : > { %656 = vmatprep.mubr.f32.mxu1 %v3207_v11 }
  0xb8   : > { %657 = vmatmul.mubr.f32.gmra.mxu1 %v3220_v17 }
  0xb9   : > { %661 = vmatprep.mubr.f32.mxu1 %v3227_v20 }
  0xbc   : > { %662 = vmatmul.mubr.f32.gmra.mxu1 %v3240_v25 }
  0xbd   : > { %666 = vmatprep.mubr.f32.mxu1 %v3244_v27 }
  0xc0   : > { %667 = vmatmul.mubr.f32.gmra.mxu1 %v3253_v30 }
  0xc1   : > { %671 = vmatprep.mubr.f32.mxu1 %v3256_v31 }
  0xc4   : > { %672 = vmatmul.mubr.f32.gmra.mxu1 %v3263_v32 }
  0xc5   : > { %676 = vmatprep.mubr.f32.mxu1 %v3085_v13 }
  0xc8   : > { %677 = vmatmul.mubr.f32.gmra.mxu1 %v3108_v33 }
  0xc9   : > { %681 = vmatprep.mubr.f32.mxu1 %v3113_v36 }
  0xcc   : > { %682 = vmatmul.mubr.f32.gmra.mxu1 %v3120_v39 }
  0xcd   : > { %686 = vmatprep.mubr.f32.mxu1 %v3125_v42 }
  0xd0   : > { %687 = vmatmul.mubr.f32.gmra.mxu1 %v3136_v46 }
  0xd1   : > { %691 = vmatprep.mubr.f32.mxu1 %v3144_v50 }
  0xd4   : > { %692 = vmatmul.mubr.f32.gmra.mxu1 %v3156_v54 }
  0xd5   : > { %696 = vmatprep.mubr.f32.mxu1 %v3164_v58 }
  0xd8   : > { %697 = vmatmul.mubr.f32.gmra.mxu1 %v3176_v62 }
  0xd9   : > { %701 = vmatprep.mubr.f32.mxu1 %v3184_v2 }
  0xdc   : > { %702 = vmatmul.mubr.f32.gmra.mxu1 %v3196_v6 }
  0xdd   : > { %706 = vmatprep.mubr.f32.mxu1 %v3204_v10 }
  0xe0   : > { %707 = vmatmul.mubr.f32.gmra.mxu1 %v3216_v15 }
  0xe1   : > { %711 = vmatprep.mubr.f32.mxu1 %v3224_v19 }
  0xe4   : > { %712 = vmatmul.mubr.f32.gmra.mxu1 %v3236_v23 }
 0x148   : > { %v2072_v34 = vpop.f32.mrf.mxu1 }
 0x14a   : > { %v2073_v35 = vpop.f32.mrf.mxu1 }
 0x14b   : > { %v3296_v37 = vadd.f32 %v2073_v35, %v2072_v34 }
 0x14c   : > { %v2075_v38 = vpop.f32.mrf.mxu1 }
 0x14d   : > { %3904 = vst [vmem:[#allocation26_spill] sm:$0xff] %v3296_v37 }
 0x14e   : > { %v2076_v40 = vpop.f32.mrf.mxu1  ;;  %v2048_v43 = vpop.f32.mrf.mxu0 }
 0x14f   : > { %v3298_v41 = vadd.f32 %v2076_v40, %v2075_v38 }
 0x150   : > { %v2078_v44 = vpop.f32.mrf.mxu1  ;;  %v2049_v49 = vpop.f32.mrf.mxu0 }
 0x151   : > { %3905 = vst [vmem:[#allocation27_spill] sm:$0xff] %v3298_v41  ;;  %v2050_v53 = vadd.f32 %v2049_v49, %v2048_v43  ;;  %v1974_v41 = vld [vmem:[%s3065_s30 + $0x208] sm:$0xff] }
 0x152   : > { %v2079_v45 = vpop.f32.mrf.mxu1 }
 0x153   : > { %v3300_v47 = vadd.f32 %v2079_v45, %v2078_v44  ;;  %v895_v57 = vmul.f32 0.088388346, %v2050_v53 }
 0x154   : > { %v2081_v52 = vpop.f32.mrf.mxu1 }
 0x155   : > { %3906 = vst [vmem:[#allocation28_spill] sm:$0xff] %v3300_v47  ;;  %2352 = vmatprep.mubr.f32.mxu1 %v895_v57 }
 0x156   : > { %v2082_v55 = vpop.f32.mrf.mxu1 }
 0x157   : > { %v3302_v60 = vadd.f32 %v2082_v55, %v2081_v52 }
 0x158   : > { %v2084_v61 = vpop.f32.mrf.mxu1 }
 0x159   : > { %3907 = vst [vmem:[#allocation29_spill] sm:$0xff] %v3302_v60 }
 0x15a   : > { %v2085_v63 = vpop.f32.mrf.mxu1 }
 0x15b   : > { %v3304_v1 = vadd.f32 %v2085_v63, %v2084_v61 }
 0x15c   : > { %v2087_v4 = vpop.f32.mrf.mxu1 }
 0x15d   : > { %3908 = vst [vmem:[#allocation30_spill] sm:$0xff] %v3304_v1  ;;  %v1991_v1 = vld [vmem:[%s3065_s30 + $0x290] sm:$0xff] }
 0x15e   : > { %v2088_v5 = vpop.f32.mrf.mxu1 }
 0x15f   : > { %v3306_v7 = vadd.f32 %v2088_v5, %v2087_v4 }
 0x160   : > { %v2090_v9 = vpop.f32.mrf.mxu1 }
 0x161   : > { %3909 = vst [vmem:[#allocation31_spill] sm:$0xff] %v3306_v7  ;;  %v1992_v7 = vld [vmem:[%s3065_s30 + $0x298] sm:$0xff] }
 0x162   : > { %v2091_v12 = vpop.f32.mrf.mxu1 }
 0x163   : > { %v3308_v14 = vadd.f32 %v2091_v12, %v2090_v9  ;;  %v2004_v12 = vld [vmem:[%s3065_s30 + $0x2f8] sm:$0xff] }
 0x164   : > { %v2093_v16 = vpop.f32.mrf.mxu1  ;;  %2176 = vmatprep.subr.mxu0 %v2004_v12  ;;  %v1998_v12 = vld [vmem:[%s3065_s30 + $0x2c8] sm:$0xff] }
 0x165   : > { %3910 = vst [vmem:[#allocation32_spill] sm:$0xff] %v3308_v14  ;;  %v1993_v14 = vld [vmem:[%s3065_s30 + $0x2a0] sm:$0xff] }
 0x166   : > { %v2094_v18 = vpop.f32.mrf.mxu1 }
 0x167   : > { %v3310_v21 = vadd.f32 %v2094_v18, %v2093_v16  ;;  %v1988_v16 = vld [vmem:[%s3065_s30 + $0x278] sm:$0xff]  ;;  %v2003_v18 = vld [vmem:[%s3065_s30 + $0x2f0] sm:$0xff] }
 0x168   : > { %v2128_v22 = vpop.f32.mrf.mxu1  ;;  %2177 = vmatpush3.msra.mxu0 %v1988_v16 }
 0x169   : > { %3911 = vst [vmem:[#allocation33_spill] sm:$0xff] %v3310_v21  ;;  %2178 = vmatprep.subr.mxu0 %v2003_v18  ;;  %v1982_v18 = vld [vmem:[%s3065_s30 + $0x248] sm:$0xff] }
 0x16a   : > { %v2129_v24 = vpop.f32.mrf.mxu1  ;;  %v1994_v21 = vld [vmem:[%s3065_s30 + $0x2a8] sm:$0xff] }
 0x16b   : > { %v3312_v26 = vadd.f32 %v2129_v24, %v2128_v22  ;;  %v1987_v24 = vld [vmem:[%s3065_s30 + $0x270] sm:$0xff] }
 0x16c   : > { %v2131_v28 = vpop.f32.mrf.mxu1  ;;  %2179 = vmatpush3.msra.mxu0 %v1987_v24  ;;  %v1997_v24 = vld [vmem:[%s3065_s30 + $0x2c0] sm:$0xff] }
 0x16d   : > { %3912 = vst [vmem:[#allocation34_spill] sm:$0xff] %v3312_v26 }
 0x16e   : > { %v2132_v29 = vpop.f32.mrf.mxu1 }
 0x16f   : > { %v3314_v34 = vadd.f32 %v2132_v29, %v2131_v28  ;;  %v2002_v28 = vld [vmem:[%s3065_s30 + $0x2e8] sm:$0xff] }
 0x170   : > { %v2134_v35 = vpop.f32.mrf.mxu1  ;;  %2180 = vmatprep.subr.mxu0 %v2002_v28 }
 0x172   : > { %v2135_v38 = vpop.f32.mrf.mxu1 }
 0x173   : > { %v3316_v40 = vadd.f32 %v2135_v38, %v2134_v35  ;;  %v1986_v35 = vld [vmem:[%s3065_s30 + $0x268] sm:$0xff]  ;;  %v2001_v38 = vld [vmem:[%s3065_s30 + $0x2e0] sm:$0xff] }
 0x174   : > { %v2137_v43 = vpop.f32.mrf.mxu1  ;;  %2181 = vmatpush3.msra.mxu0 %v1986_v35  ;;  %v1981_v35 = vld [vmem:[%s3065_s30 + $0x240] sm:$0xff] }
 0x175   : > { %2182 = vmatprep.subr.mxu0 %v2001_v38  ;;  %v1996_v38 = vld [vmem:[%s3065_s30 + $0x2b8] sm:$0xff] }
 0x176   : > { %v2138_v44 = vpop.f32.mrf.mxu1 }
 0x177   : > { %v3318_v45 = vadd.f32 %v2138_v44, %v2137_v43  ;;  %v1985_v44 = vld [vmem:[%s3065_s30 + $0x260] sm:$0xff] }
 0x178   : > { %v2140_v49 = vpop.f32.mrf.mxu1  ;;  %2183 = vmatpush3.msra.mxu0 %v1985_v44 }
 0x17a   : > { %v2141_v52 = vpop.f32.mrf.mxu1 }
 0x17b   : > { %v3320_v53 = vadd.f32 %v2141_v52, %v2140_v49  ;;  %v2000_v49 = vld [vmem:[%s3065_s30 + $0x2d8] sm:$0xff] }
 0x17c   : > { %v2143_v55 = vpop.f32.mrf.mxu1  ;;  %2184 = vmatprep.subr.mxu0 %v2000_v49  ;;  %v1980_v49 = vld [vmem:[%s3065_s30 + $0x238] sm:$0xff] }
 0x17e   : > { %v2144_v57 = vpop.f32.mrf.mxu1 }
 0x17f   : > { %v3322_v61 = vadd.f32 %v2144_v57, %v2143_v55  ;;  %v1984_v55 = vld [vmem:[%s3065_s30 + $0x258] sm:$0xff]  ;;  %v1999_v57 = vld [vmem:[%s3065_s30 + $0x2d0] sm:$0xff] }
 0x180   : > { %v2146_v63 = vpop.f32.mrf.mxu1  ;;  %2185 = vmatpush3.msra.mxu0 %v1984_v55  ;;  %v1995_v55 = vld [vmem:[%s3065_s30 + $0x2b0] sm:$0xff] }
 0x181   : > { %2186 = vmatprep.subr.mxu0 %v1999_v57 }
 0x182   : > { %v2147_v4 = vpop.f32.mrf.mxu1 }
 0x183   : > { %v3324_v5 = vadd.f32 %v2147_v4, %v2146_v63  ;;  %v1983_v4 = vld [vmem:[%s3065_s30 + $0x250] sm:$0xff] }
 0x184   : > { %v3326_v9 = vpop.f32.mrf.mxu1  ;;  %2187 = vmatpush3.msra.mxu0 %v1983_v4  ;;  %v1979_v4 = vld [vmem:[%s3065_s30 + $0x230] sm:$0xff] }
 0x185   : > { %2188 = vmatprep.subr.mxu0 %v1998_v12 }
 0x186   : > { %v3331_v22 = vpop.f32.mrf.mxu1  ;;  %2189 = vmatpush3.msra.mxu0 %v1982_v18  ;;  %v1978_v18 = vld [vmem:[%s3065_s30 + $0x228] sm:$0xff] }
 0x187   : > { %2190 = vmatprep.subr.mxu0 %v1997_v24 }
 0x188   : > { %v3335_v29 = vpop.f32.mrf.mxu1  ;;  %2191 = vmatpush3.msra.mxu0 %v1981_v35  ;;  %v1977_v35 = vld [vmem:[%s3065_s30 + $0x220] sm:$0xff] }
 0x189   : > { %2192 = vmatprep.subr.mxu0 %v1996_v38 }
 0x18a   : > { %v3339_v43 = vpop.f32.mrf.mxu1  ;;  %2193 = vmatpush3.msra.mxu0 %v1980_v49  ;;  %v1976_v49 = vld [vmem:[%s3065_s30 + $0x218] sm:$0xff] }
 0x18b   : > { %2194 = vmatprep.subr.mxu0 %v1995_v55  ;;  %v1975_v55 = vld [vmem:[%s3065_s30 + $0x210] sm:$0xff] }
 0x18c   : > { %v3343_v52 = vpop.f32.mrf.mxu1  ;;  %2195 = vmatpush3.msra.mxu0 %v1979_v4  ;;  %v1990_v4 = vld [vmem:[%s3065_s30 + $0x288] sm:$0xff] }
 0x18d   : > { %2196 = vmatprep.subr.mxu0 %v1994_v21  ;;  %v1989_v21 = vld [vmem:[%s3065_s30 + $0x280] sm:$0xff] }
 0x18e   : > { %v3347_v63 = vpop.f32.mrf.mxu1  ;;  %2197 = vmatpush3.msra.mxu0 %v1978_v18  ;;  %v1973_v18 = vld [vmem:[%s3065_s30 + $0x200] sm:$0xff] }
 0x18f   : > { %2198 = vmatprep.subr.mxu0 %v1993_v14 }
 0x190   : > { %v3351_v16 = vpop.f32.mrf.mxu1  ;;  %2199 = vmatpush3.msra.mxu0 %v1977_v35 }
 0x191   : > { %2200 = vmatprep.subr.mxu0 %v1992_v7 }
 0x192   : > { %v3355_v28 = vpop.f32.mrf.mxu1  ;;  %2201 = vmatpush3.msra.mxu0 %v1976_v49 }
 0x193   : > { %2202 = vmatprep.subr.mxu0 %v1991_v1 }
 0x194   : > { %v2161_v44 = vpop.f32.mrf.mxu1  ;;  %2203 = vmatpush3.msra.mxu0 %v1975_v55 }
 0x195   : > { %2204 = vmatprep.subr.mxu0 %v1990_v4 }
 0x196   : > { %v2162_v57 = vpop.f32.mrf.mxu1  ;;  %2205 = vmatpush3.msra.mxu0 %v1974_v41 }
 0x197   : > { %2206 = vmatprep.subr.mxu0 %v1989_v21 }
 0x198   : > { %v2164_v12 = vpop.f32.mrf.mxu1  ;;  %2207 = vmatpush3.msra.mxu0 %v1973_v18 }
 0x199   : > { %815 = vmatmul.mubr.f32.vlgmr.msra.gmra.mxu0 %v3140_v48  ;;  %v2163_v48 = vadd.f32 %v2162_v57, %v2161_v44 }
 0x19a   : > { %v2165_v24 = vpop.f32.mrf.mxu1  ;;  %819 = vmatprep.mubr.f32.mxu0 %v3147_v51  ;;  %v2051_v51 = vpop.f32.mrf.mxu0 }
 0x19b   : > { %v2166_v41 = vadd.f32 %v2165_v24, %v2164_v12 }
 0x19c   : > { %v2167_v38 = vpop.f32.mrf.mxu1 }
 0x19d   : > { %820 = vmatmul.mubr.f32.gmra.mxu0 %v3160_v56  ;;  %v2160_v56 = vadd.f32 %v3355_v28, %v3351_v16  ;;  %v3921_v28 = vld [vmem:[#allocation33_spill] sm:$0xff] }
 0x19e   : > { %v2168_v60 = vpop.f32.mrf.mxu1  ;;  %824 = vmatprep.mubr.f32.mxu0 %v3167_v59  ;;  %v2052_v59 = vpop.f32.mrf.mxu0  ;;  %v910_v44 = vmul.f32 0.088388346, %v3921_v28 }
 0x19f   : > { %v2169_v1 = vadd.f32 %v2168_v60, %v2167_v38 }
 0x1a0   : > { %v2170_v47 = vpop.f32.mrf.mxu1 }
 0x1a1   : > { %825 = vmatmul.mubr.f32.gmra.mxu0 %v3180_v0  ;;  %v2157_v0 = vadd.f32 %v3347_v63, %v3343_v52  ;;  %v3920_v63 = vld [vmem:[#allocation32_spill] sm:$0xff] }
 0x1a2   : > { %v2171_v37 = vpop.f32.mrf.mxu1  ;;  %829 = vmatprep.mubr.f32.mxu0 %v3187_v3  ;;  %v2054_v3 = vpop.f32.mrf.mxu0  ;;  %v909_v16 = vmul.f32 0.088388346, %v3920_v63 }
 0x1a3   : > { %v2172_v7 = vadd.f32 %v2171_v37, %v2170_v47 }
 0x1a4   : > { %v2173_v26 = vpop.f32.mrf.mxu1 }
 0x1a5   : > { %830 = vmatmul.mubr.f32.gmra.mxu0 %v3200_v8  ;;  %v2154_v8 = vadd.f32 %v3339_v43, %v3335_v29  ;;  %v3919_v43 = vld [vmem:[#allocation31_spill] sm:$0xff] }
 0x1a6   : > { %v2174_v14 = vpop.f32.mrf.mxu1  ;;  %834 = vmatprep.mubr.f32.mxu0 %v3207_v11  ;;  %v2055_v11 = vpop.f32.mrf.mxu0  ;;  %v908_v52 = vmul.f32 0.088388346, %v3919_v43 }
 0x1a7   : > { %v2175_v35 = vadd.f32 %v2174_v14, %v2173_v26  ;;  %v3914_v26 = vld [vmem:[#allocation26_spill] sm:$0xff] }
 0x1a9   : > { %2320 = vmatprep.subr.mxu1 %v2175_v35  ;;  %835 = vmatmul.mubr.f32.gmra.mxu0 %v3220_v17  ;;  %v2151_v17 = vadd.f32 %v3331_v22, %v3326_v9  ;;  %v3918_v22 = vld [vmem:[#allocation30_spill] sm:$0xff] }
 0x1aa   : > { %2321 = vmatpush3.xpose.msra.mxu1 %v2175_v35  ;;  %839 = vmatprep.mubr.f32.mxu0 %v3227_v20  ;;  %v2057_v20 = vpop.f32.mrf.mxu0  ;;  %v907_v29 = vmul.f32 0.088388346, %v3918_v22 }
 0x1ab   : > { %2322 = vmatprep.subr.mxu1 %v2172_v7 }
 0x1ad   : > { %840 = vmatmul.mubr.f32.gmra.mxu0 %v3240_v25  ;;  %v2058_v25 = vpop.f32.mrf.mxu0 }
 0x1ae   : > { %2323 = vmatpush3.xpose.msra.mxu1 %v2172_v7  ;;  %844 = vmatprep.mubr.f32.mxu0 %v3244_v27 }
 0x1af   : > { %2324 = vmatprep.subr.mxu1 %v2169_v1 }
 0x1b1   : > { %845 = vmatmul.mubr.f32.gmra.mxu0 %v3253_v30 }
 0x1b2   : > { %2325 = vmatpush3.xpose.msra.mxu1 %v2169_v1  ;;  %849 = vmatprep.mubr.f32.mxu0 %v3256_v31 }
 0x1b3   : > { %2326 = vmatprep.subr.mxu1 %v2166_v41 }
 0x1b5   : > { %850 = vmatmul.mubr.f32.gmra.mxu0 %v3263_v32 }
 0x1b6   : > { %2327 = vmatpush3.xpose.msra.mxu1 %v2166_v41  ;;  %854 = vmatprep.mubr.f32.mxu0 %v3085_v13  ;;  %v2060_v13 = vpop.f32.mrf.mxu0 }
 0x1b7   : > { %2328 = vmatprep.subr.mxu1 %v2163_v48 }
 0x1b9   : > { %855 = vmatmul.mubr.f32.gmra.mxu0 %v3108_v33  ;;  %v2061_v33 = vpop.f32.mrf.mxu0 }
 0x1ba   : > { %2329 = vmatpush3.xpose.msra.mxu1 %v2163_v48  ;;  %859 = vmatprep.mubr.f32.mxu0 %v3113_v36 }
 0x1bb   : > { %2330 = vmatprep.subr.mxu1 %v2160_v56  ;;  %v2063_v36 = vpop.f32.mrf.mxu0 }
 0x1bd   : > { %860 = vmatmul.mubr.f32.gmra.mxu0 %v3120_v39  ;;  %v2064_v39 = vpop.f32.mrf.mxu0 }
 0x1be   : > { %2331 = vmatpush3.xpose.msra.mxu1 %v2160_v56  ;;  %864 = vmatprep.mubr.f32.mxu0 %v3125_v42  ;;  %v2065_v30 = vadd.f32 %v2064_v39, %v2063_v36 }
 0x1bf   : > { %2332 = vmatprep.subr.mxu1 %v2157_v0  ;;  %v2066_v42 = vpop.f32.mrf.mxu0 }
 0x1c0   : > { %v900_v37 = vmul.f32 0.088388346, %v2065_v30 }
 0x1c1   : > { %865 = vmatmul.mubr.f32.gmra.mxu0 %v3136_v46  ;;  %v2056_v46 = vadd.f32 %v2055_v11, %v2054_v3 }
 0x1c2   : > { %2333 = vmatpush3.xpose.msra.mxu1 %v2157_v0  ;;  %869 = vmatprep.mubr.f32.mxu0 %v3144_v50  ;;  %v2067_v50 = vpop.f32.mrf.mxu0 }
 0x1c3   : > { %2334 = vmatprep.subr.mxu1 %v2154_v8  ;;  %v2068_v31 = vadd.f32 %v2067_v50, %v2066_v42 }
 0x1c5   : > { %870 = vmatmul.mubr.f32.gmra.mxu0 %v3156_v54  ;;  %v2053_v54 = vadd.f32 %v2052_v59, %v2051_v51  ;;  %v901_v47 = vmul.f32 0.088388346, %v2068_v31 }
 0x1c6   : > { %2335 = vmatpush3.xpose.msra.mxu1 %v2154_v8  ;;  %874 = vmatprep.mubr.f32.mxu0 %v3164_v58  ;;  %v3913_v58 = vld [vmem:[#allocation34_spill] sm:$0xff] }
 0x1c7   : > { %2336 = vmatprep.subr.mxu1 %v2151_v17 }
 0x1c9   : > { %875 = vmatmul.mubr.f32.gmra.mxu0 %v3176_v62  ;;  %v2059_v62 = vadd.f32 %v2058_v25, %v2057_v20 }
 0x1ca   : > { %2337 = vmatpush3.xpose.msra.mxu1 %v2151_v17  ;;  %879 = vmatprep.mubr.f32.mxu0 %v3184_v2  ;;  %v897_v2 = vmul.f32 0.088388346, %v2056_v46 }
 0x1cb   : > { %2338 = vmatprep.subr.mxu1 %v3324_v5  ;;  %v898_v27 = vmul.f32 0.088388346, %v2059_v62 }
 0x1cd   : > { %880 = vmatmul.mubr.f32.gmra.mxu0 %v3196_v6  ;;  %v2062_v6 = vadd.f32 %v2061_v33, %v2060_v13 }
 0x1ce   : > { %2339 = vmatpush3.xpose.msra.mxu1 %v3324_v5  ;;  %884 = vmatprep.mubr.f32.mxu0 %v3204_v10  ;;  %v2069_v10 = vpop.f32.mrf.mxu0  ;;  %v3917_v5 = vld [vmem:[#allocation29_spill] sm:$0xff] }
 0x1cf   : > { %2340 = vmatprep.subr.mxu1 %v3322_v61  ;;  %v906_v9 = vmul.f32 0.088388346, %v3917_v5 }
 0x1d0   : > { %v2070_v32 = vpop.f32.mrf.mxu0 }
 0x1d1   : > { %885 = vmatmul.mubr.f32.gmra.mxu0 %v3216_v15  ;;  %v896_v15 = vmul.f32 0.088388346, %v2053_v54 }
 0x1d2   : > { %2341 = vmatpush3.xpose.msra.mxu1 %v3322_v61  ;;  %889 = vmatprep.mubr.f32.mxu0 %v3224_v19  ;;  %v899_v19 = vmul.f32 0.088388346, %v2062_v6 }
 0x1d3   : > { %2342 = vmatprep.subr.mxu1 %v3320_v53 }
 0x1d5   : > { %890 = vmatmul.mubr.f32.gmra.mxu0 %v3236_v23  ;;  %v2071_v23 = vadd.f32 %v2070_v32, %v2069_v10 }
 0x1d6   : > { %2343 = vmatpush3.xpose.msra.mxu1 %v3320_v53  ;;  %v3916_v53 = vld [vmem:[#allocation28_spill] sm:$0xff] }
 0x1d7   : > { %2344 = vmatprep.subr.mxu1 %v3318_v45  ;;  %v902_v60 = vmul.f32 0.088388346, %v2071_v23  ;;  %v905_v61 = vmul.f32 0.088388346, %v3916_v53 }
 0x1da   : > { %2345 = vmatpush3.xpose.msra.mxu1 %v3318_v45 }
 0x1db   : > { %2346 = vmatprep.subr.mxu1 %v3316_v40 }
 0x1de   : > { %2347 = vmatpush3.xpose.msra.mxu1 %v3316_v40  ;;  %v3915_v40 = vld [vmem:[#allocation27_spill] sm:$0xff] }
 0x1df   : > { %2348 = vmatprep.subr.mxu1 %v3314_v34  ;;  %v904_v45 = vmul.f32 0.088388346, %v3915_v40 }
 0x1e2   : > { %2349 = vmatpush3.xpose.msra.mxu1 %v3314_v34  ;;  %v903_v34 = vmul.f32 0.088388346, %v3914_v26 }
 0x1e3   : > { %2350 = vmatprep.subr.mxu1 %v3913_v58 }
 0x1e6   : > { %2351 = vmatpush3.xpose.msra.mxu1 %v3913_v58 }
 0x1e9   : > { %2353 = vmatmul.mubr.f32.vlgmr.msra.gmra.mxu1 %v896_v15 }
 0x1ea   : > { %2355 = vmatprep.mubr.f32.mxu1 %v897_v2 }
 0x1ed   : > { %2356 = vmatmul.mubr.f32.gmra.mxu1 %v898_v27 }
 0x1ee   : > { %2358 = vmatprep.mubr.f32.mxu1 %v899_v19 }
 0x1f1   : > { %2359 = vmatmul.mubr.f32.gmra.mxu1 %v900_v37 }
 0x1f2   : > { %2361 = vmatprep.mubr.f32.mxu1 %v901_v47 }
 0x1f5   : > { %2362 = vmatmul.mubr.f32.gmra.mxu1 %v902_v60 }
 0x1f6   : > { %2364 = vmatprep.mubr.f32.mxu1 %v903_v34 }
 0x1f9   : > { %2365 = vmatmul.mubr.f32.gmra.mxu1 %v904_v45 }
 0x1fa   : > { %2367 = vmatprep.mubr.f32.mxu1 %v905_v61 }
 0x1fd   : > { %2368 = vmatmul.mubr.f32.gmra.mxu1 %v906_v9 }
 0x1fe   : > { %2370 = vmatprep.mubr.f32.mxu1 %v907_v29 }
 0x201   : > { %2371 = vmatmul.mubr.f32.gmra.mxu1 %v908_v52 }
 0x202   : > { %2373 = vmatprep.mubr.f32.mxu1 %v909_v16 }
 0x205   : > { %2374 = vmatmul.mubr.f32.gmra.mxu1 %v910_v44 }
 0x259   : > { %v2208_v57 = vpop.f32.mrf.mxu0 }
 0x25b   : > { %v2209_v12 = vpop.f32.mrf.mxu0 }
 0x25c   : > { %v3435_v24 = vadd.f32 %v2209_v12, %v2208_v57 }
 0x25d   : > { %v2211_v38 = vpop.f32.mrf.mxu0 }
 0x25f   : > { %v2212_v49 = vpop.f32.mrf.mxu0 }
 0x260   : > { %v3437_v55 = vadd.f32 %v2212_v49, %v2211_v38 }
 0x261   : > { %v2214_v4 = vpop.f32.mrf.mxu0 }
 0x263   : > { %v2215_v21 = vpop.f32.mrf.mxu0 }
 0x264   : > { %v3439_v18 = vadd.f32 %v2215_v21, %v2214_v4 }
 0x265   : > { %v2217_v48 = vpop.f32.mrf.mxu0 }
 0x267   : > { %v2218_v59 = vpop.f32.mrf.mxu0 }
 0x268   : > { %v3466_v11 = vadd.f32 %v2218_v59, %v2217_v48 }
 0x269   : > { %v2220_v3 = vpop.f32.mrf.mxu0 }
 0x26b   : > { %v2221_v20 = vpop.f32.mrf.mxu0 }
 0x26c   : > { %v3476_v36 = vadd.f32 %v2221_v20, %v2220_v3 }
 0x26d   : > { %v2223_v13 = vpop.f32.mrf.mxu0 }
 0x26f   : > { %v2224_v39 = vpop.f32.mrf.mxu0 }
 0x270   : > { %v2225_v44 = vadd.f32 %v2224_v39, %v2223_v13 }
 0x271   : > { %v2226_v46 = vpop.f32.mrf.mxu0 }
 0x273   : > { %v2227_v54 = vpop.f32.mrf.mxu0 }
 0x274   : > { %v2228_v28 = vadd.f32 %v2227_v54, %v2226_v46 }
 0x275   : > { %v2229_v62 = vpop.f32.mrf.mxu0 }
 0x277   : > { %v2230_v6 = vpop.f32.mrf.mxu0 }
 0x278   : > { %v2231_v16 = vadd.f32 %v2230_v6, %v2229_v62 }
 0x279   : > { %v2232_v10 = vpop.f32.mrf.mxu0 }
 0x27b   : > { %v2233_v15 = vpop.f32.mrf.mxu0 }
 0x27c   : > { %v2234_v63 = vadd.f32 %v2233_v15, %v2232_v10 }
 0x27d   : > { %v2235_v27 = vpop.f32.mrf.mxu0 }
 0x27f   : > { %v2236_v30 = vpop.f32.mrf.mxu0 }
 0x280   : > { %v2237_v52 = vadd.f32 %v2236_v30, %v2235_v27 }
 0x281   : > { %v2238_v19 = vpop.f32.mrf.mxu0 }
 0x283   : > { %v2239_v31 = vpop.f32.mrf.mxu0 }
 0x284   : > { %v2240_v43 = vadd.f32 %v2239_v31, %v2238_v19 }
 0x285   : > { %v2241_v32 = vpop.f32.mrf.mxu0 }
 0x287   : > { %v2242_v37 = vpop.f32.mrf.mxu0 }
 0x288   : > { %v2243_v29 = vadd.f32 %v2242_v37, %v2241_v32 }
 0x289   : > { %v2244_v23 = vpop.f32.mrf.mxu0 }
 0x28b   : > { %v2245_v47 = vpop.f32.mrf.mxu0 }
 0x28c   : > { %v2246_v22 = vadd.f32 %v2245_v47, %v2244_v23 }
 0x28d   : > { %v2247_v60 = vpop.f32.mrf.mxu0 }
 0x28f   : > { %v2248_v26 = vpop.f32.mrf.mxu0 }
 0x290   : > { %v2249_v9 = vadd.f32 %v2248_v26, %v2247_v60 }
 0x291   : > { %v2250_v34 = vpop.f32.mrf.mxu0 }
 0x293   : > { %v2251_v40 = vpop.f32.mrf.mxu0 }
 0x294   : > { %v2252_v61 = vadd.f32 %v2251_v40, %v2250_v34 }
 0x295   : > { %v2253_v45 = vpop.f32.mrf.mxu0 }
 0x297   : > { %v2254_v53 = vpop.f32.mrf.mxu0 }
 0x298   : > { %v2255_v5 = vadd.f32 %v2254_v53, %v2253_v45 }
 0x29a   : > { %2376 = vmatprep.subr.mxu1 %v2255_v5 }
 0x29b   : > { %2377 = vmatpush3.msra.mxu1 %v2255_v5 }
 0x29c   : > { %2378 = vmatprep.subr.mxu1 %v2252_v61 }
 0x29d   : > { %2379 = vmatpush3.msra.mxu1 %v2252_v61 }
 0x29e   : > { %2380 = vmatprep.subr.mxu1 %v2249_v9 }
 0x29f   : > { %2381 = vmatpush3.msra.mxu1 %v2249_v9 }
 0x2a0   : > { %2382 = vmatprep.subr.mxu1 %v2246_v22 }
 0x2a1   : > { %2383 = vmatpush3.msra.mxu1 %v2246_v22 }
 0x2a2   : > { %2384 = vmatprep.subr.mxu1 %v2243_v29 }
 0x2a3   : > { %2385 = vmatpush3.msra.mxu1 %v2243_v29 }
 0x2a4   : > { %2386 = vmatprep.subr.mxu1 %v2240_v43 }
 0x2a5   : > { %2387 = vmatpush3.msra.mxu1 %v2240_v43 }
 0x2a6   : > { %2388 = vmatprep.subr.mxu1 %v2237_v52 }
 0x2a7   : > { %2389 = vmatpush3.msra.mxu1 %v2237_v52 }
 0x2a8   : > { %2390 = vmatprep.subr.mxu1 %v2234_v63 }
 0x2a9   : > { %v3441_v14 = vpop.f32.mrf.mxu1  ;;  %2391 = vmatpush3.msra.mxu1 %v2234_v63 }
 0x2aa   : > { %2392 = vmatprep.subr.mxu1 %v2231_v16 }
 0x2ab   : > { %v3443_v35 = vpop.f32.mrf.mxu1  ;;  %2393 = vmatpush3.msra.mxu1 %v2231_v16 }
 0x2ac   : > { %1056 = vmax.xlane.f32.xlu0 %v3443_v35  ;;  %2394 = vmatprep.subr.mxu1 %v2228_v28 }
 0x2ad   : > { %v3446_v7 = vpop.f32.mrf.mxu1  ;;  %2395 = vmatpush3.msra.mxu1 %v2228_v28 }
 0x2ae   : > { %2396 = vmatprep.subr.mxu1 %v2225_v44 }
 0x2af   : > { %v3448_v1 = vpop.f32.mrf.mxu1  ;;  %2397 = vmatpush3.msra.mxu1 %v2225_v44 }
 0x2b0   : > { %1058 = vmax.xlane.f32.xlu0 %v3441_v14  ;;  %1060 = vmax.xlane.f32.xlu1 %v3448_v1 }
 0x2b1   : > { %v3452_v41 = vpop.f32.mrf.mxu1  ;;  %2398 = vmatprep.subr.mxu1 %v3476_v36 }
 0x2b2   : > { %2399 = vmatpush3.msra.mxu1 %v3476_v36 }
 0x2b3   : > { %v3454_v51 = vpop.f32.mrf.mxu1  ;;  %2400 = vmatprep.subr.mxu1 %v3466_v11 }
 0x2b4   : > { %1062 = vmax.xlane.f32.xlu1 %v3446_v7  ;;  %1064 = vmax.xlane.f32.xlu0 %v3454_v51 }
 0x2b5   : > { %v3458_v56 = vpop.f32.mrf.mxu1  ;;  %2401 = vmatpush3.msra.mxu1 %v3466_v11 }
 0x2b6   : > { %2402 = vmatprep.subr.mxu1 %v3439_v18 }
 0x2b7   : > { %v3460_v0 = vpop.f32.mrf.mxu1  ;;  %2403 = vmatpush3.msra.mxu1 %v3439_v18 }
 0x2b8   : > { %1066 = vmax.xlane.f32.xlu1 %v3452_v41  ;;  %1068 = vmax.xlane.f32.xlu0 %v3460_v0 }
 0x2b9   : > { %v3464_v8 = vpop.f32.mrf.mxu1  ;;  %2404 = vmatprep.subr.mxu1 %v3437_v55 }
 0x2ba   : > { %2405 = vmatpush3.msra.mxu1 %v3437_v55 }
 0x2bb   : > { %v3468_v17 = vpop.f32.mrf.mxu1  ;;  %2406 = vmatprep.subr.mxu1 %v3435_v24 }
 0x2bc   : > { %1070 = vmax.xlane.f32.xlu1 %v3458_v56  ;;  %1072 = vmax.xlane.f32.xlu0 %v3468_v17 }
 0x2bd   : > { %v3472_v25 = vpop.f32.mrf.mxu1  ;;  %2407 = vmatpush3.msra.mxu1 %v3435_v24 }
 0x2bf   : > { %v3474_v33 = vpop.f32.mrf.mxu1 }
 0x2c0   : > { %1074 = vmax.xlane.f32.xlu1 %v3464_v8  ;;  %1076 = vmax.xlane.f32.xlu0 %v3474_v33 }
 0x2c1   : > { %v3480_v42 = vpop.f32.mrf.mxu1 }
 0x2c3   : > { %v3482_v50 = vpop.f32.mrf.mxu1 }
 0x2c4   : > { %1078 = vmax.xlane.f32.xlu1 %v3472_v25  ;;  %1080 = vmax.xlane.f32.xlu0 %v3482_v50 }
 0x2c5   : > { %v3486_v58 = vpop.f32.mrf.mxu1 }
 0x2c7   : > { %v3488_v2 = vpop.f32.mrf.mxu1 }
 0x2c8   : > { %1082 = vmax.xlane.f32.xlu1 %v3480_v42  ;;  %1084 = vmax.xlane.f32.xlu0 %v3488_v2 }
 0x2cc   : > { %1086 = vmax.xlane.f32.xlu1 %v3486_v58 }
 0x335   : > { %v1057_v57 = vpop.xlane.xlu0 %1056 }
 0x336   : > { %v1088_v12 = vsub.f32 %v3443_v35, %v1057_v57  ;;  %v1376_v57 = vld [vmem:[%s3569_s8 + $0xf8] sm:$0xff] }
 0x337   : > { %1377 = vmatprep.subr.mxu0 %v1376_v57 }
 0x338   : > { %v1104_v38 = vmul.f32 1.442695, %v1088_v12  ;;  %v1375_v12 = vld [vmem:[%s3569_s8 + $0xf0] sm:$0xff] }
 0x339   : > { %v1059_v49 = vpop.xlane.xlu0 %1058  ;;  %v1061_v4 = vpop.xlane.xlu1 %1060  ;;  %1378 = vmatpush1.msra.mxu0 %v1375_v12 }
 0x33a   : > { %2586 = vpow2.f32 %v1104_v38  ;;  %v1089_v21 = vsub.f32 %v3441_v14, %v1059_v49  ;;  %v1090_v48 = vsub.f32 %v3448_v1, %v1061_v4  ;;  %v1374_v38 = vld [vmem:[%s3569_s8 + $0xe8] sm:$0xff]  ;;  %v1373_v49 = vld [vmem:[%s3569_s8 + $0xe0] sm:$0xff]  ;;  %v1372_v4 = vld [vmem:[%s3569_s8 + $0xd8] sm:$0xff] }
 0x33b   : > { %1379 = vmatprep.subr.mxu0 %v1374_v38 }
 0x33c   : > { %v1106_v18 = vmul.f32 1.442695, %v1089_v21  ;;  %v1108_v59 = vmul.f32 1.442695, %v1090_v48  ;;  %v1371_v21 = vld [vmem:[%s3569_s8 + $0xd0] sm:$0xff]  ;;  %1380 = vmatpush1.msra.mxu0 %v1373_v49  ;;  %v1370_v48 = vld [vmem:[%s3569_s8 + $0xc8] sm:$0xff] }
 0x33d   : > { %v1063_v3 = vpop.xlane.xlu1 %1062  ;;  %v1065_v11 = vpop.xlane.xlu0 %1064  ;;  %1381 = vmatprep.subr.mxu0 %v1372_v4 }
 0x33e   : > { %2588 = vpow2.f32 %v1106_v18  ;;  %v1091_v55 = vsub.f32 %v3446_v7, %v1063_v3  ;;  %v1092_v24 = vsub.f32 %v3454_v51, %v1065_v11  ;;  %v1369_v18 = vld [vmem:[%s3569_s8 + $0xc0] sm:$0xff]  ;;  %1382 = vmatpush1.msra.mxu0 %v1371_v21  ;;  %v1367_v3 = vld [vmem:[%s3569_s8 + $0xb0] sm:$0xff]  ;;  %v1366_v11 = vld [vmem:[%s3569_s8 + $0xa8] sm:$0xff] }
 0x33f   : > { %2590 = vpow2.f32 %v1108_v59  ;;  %v1368_v59 = vld [vmem:[%s3569_s8 + $0xb8] sm:$0xff]  ;;  %1383 = vmatprep.subr.mxu0 %v1370_v48 }
 0x340   : > { %v1110_v20 = vmul.f32 1.442695, %v1091_v55  ;;  %v1112_v35 = vmul.f32 1.442695, %v1092_v24  ;;  %1384 = vmatpush1.msra.mxu0 %v1369_v18  ;;  %v1365_v55 = vld [vmem:[%s3569_s8 + $0xa0] sm:$0xff]  ;;  %v1364_v24 = vld [vmem:[%s3569_s8 + $0x98] sm:$0xff] }
 0x341   : > { %v1067_v13 = vpop.xlane.xlu1 %1066  ;;  %v1069_v36 = vpop.xlane.xlu0 %1068  ;;  %1385 = vmatprep.subr.mxu0 %v1368_v59 }
 0x342   : > { %2592 = vpow2.f32 %v1110_v20  ;;  %v1093_v39 = vsub.f32 %v3452_v41, %v1067_v13  ;;  %v1094_v14 = vsub.f32 %v3460_v0, %v1069_v36  ;;  %1386 = vmatpush1.msra.mxu0 %v1367_v3  ;;  %v1363_v20 = vld [vmem:[%s3569_s8 + $0x90] sm:$0xff]  ;;  %v1361_v13 = vld [vmem:[%s3569_s8 + $0x80] sm:$0xff]  ;;  %v1360_v36 = vld [vmem:[%s3569_s8 + $0x78] sm:$0xff] }
 0x343   : > { %2594 = vpow2.f32 %v1112_v35  ;;  %1387 = vmatprep.subr.mxu0 %v1366_v11  ;;  %v1362_v35 = vld [vmem:[%s3569_s8 + $0x88] sm:$0xff] }
 0x344   : > { %v1114_v1 = vmul.f32 1.442695, %v1093_v39  ;;  %v1116_v46 = vmul.f32 1.442695, %v1094_v14  ;;  %1388 = vmatpush1.msra.mxu0 %v1365_v55  ;;  %v1359_v39 = vld [vmem:[%s3569_s8 + $0x70] sm:$0xff]  ;;  %v1358_v14 = vld [vmem:[%s3569_s8 + $0x68] sm:$0xff] }
 0x345   : > { %v1071_v54 = vpop.xlane.xlu1 %1070  ;;  %v1073_v62 = vpop.xlane.xlu0 %1072  ;;  %1389 = vmatprep.subr.mxu0 %v1364_v24 }
 0x346   : > { %2596 = vpow2.f32 %v1114_v1  ;;  %v1095_v7 = vsub.f32 %v3458_v56, %v1071_v54  ;;  %v1096_v51 = vsub.f32 %v3468_v17, %v1073_v62  ;;  %1390 = vmatpush1.msra.mxu0 %v1363_v20  ;;  %v1357_v1 = vld [vmem:[%s3569_s8 + $0x60] sm:$0xff]  ;;  %v1355_v54 = vld [vmem:[%s3569_s8 + $0x50] sm:$0xff]  ;;  %v1354_v62 = vld [vmem:[%s3569_s8 + $0x48] sm:$0xff] }
 0x347   : > { %v3512_v6 = vpop.eup %2586  ;;  %2598 = vpow2.f32 %v1116_v46  ;;  %1391 = vmatprep.subr.mxu0 %v1362_v35  ;;  %v1356_v46 = vld [vmem:[%s3569_s8 + $0x58] sm:$0xff] }
 0x348   : > { %v1118_v10 = vmul.f32 1.442695, %v1095_v7  ;;  %v1120_v15 = vmul.f32 1.442695, %v1096_v51  ;;  %1136 = vadd.xlane.f32.xlu0 %v3512_v6  ;;  %1392 = vmatpush1.msra.mxu0 %v1361_v13  ;;  %v1353_v7 = vld [vmem:[%s3569_s8 + $0x40] sm:$0xff]  ;;  %v1352_v51 = vld [vmem:[%s3569_s8 + $0x38] sm:$0xff] }
 0x349   : > { %v1075_v41 = vpop.xlane.xlu1 %1074  ;;  %v1077_v27 = vpop.xlane.xlu0 %1076  ;;  %1393 = vmatprep.subr.mxu0 %v1360_v36 }
 0x34a   : > { %2600 = vpow2.f32 %v1118_v10  ;;  %v1097_v0 = vsub.f32 %v3464_v8, %v1075_v41  ;;  %v1098_v30 = vsub.f32 %v3474_v33, %v1077_v27  ;;  %1394 = vmatpush1.msra.mxu0 %v1359_v39  ;;  %v1351_v10 = vld [vmem:[%s3569_s8 + $0x30] sm:$0xff]  ;;  %v1349_v41 = vld [vmem:[%s3569_s8 + $0x20] sm:$0xff]  ;;  %v1348_v27 = vld [vmem:[%s3569_s8 + $0x18] sm:$0xff] }
 0x34b   : > { %v3517_v19 = vpop.eup %2588  ;;  %2602 = vpow2.f32 %v1120_v15  ;;  %1395 = vmatprep.subr.mxu0 %v1358_v14  ;;  %v1350_v15 = vld [vmem:[%s3569_s8 + $0x28] sm:$0xff] }
 0x34c   : > { %v3519_v56 = vpop.eup %2590  ;;  %v1122_v17 = vmul.f32 1.442695, %v1097_v0  ;;  %v1124_v31 = vmul.f32 1.442695, %v1098_v30  ;;  %1138 = vadd.xlane.f32.xlu1 %v3517_v19  ;;  %1396 = vmatpush1.msra.mxu0 %v1357_v1  ;;  %v1347_v0 = vld [vmem:[%s3569_s8 + $0x10] sm:$0xff]  ;;  %v1346_v30 = vld [vmem:[%s3569_s8 + $0x8] sm:$0xff] }
 0x34d   : > { %1140 = vadd.xlane.f32.xlu0 %v3519_v56  ;;  %v1079_v32 = vpop.xlane.xlu1 %1078  ;;  %v1081_v37 = vpop.xlane.xlu0 %1080  ;;  %1397 = vmatprep.subr.mxu0 %v1356_v46  ;;  %v1345_v46 = vld [vmem:[%s3569_s8] sm:$0xff] }
 0x34e   : > { %2604 = vpow2.f32 %v1122_v17  ;;  %v1099_v23 = vsub.f32 %v3472_v25, %v1079_v32  ;;  %v1100_v8 = vsub.f32 %v3482_v50, %v1081_v37  ;;  %1398 = vmatpush1.msra.mxu0 %v1355_v54  ;;  %v2838_v54 = vmov 0.0  }
 0x34f   : > { %v3525_v47 = vpop.eup %2592  ;;  %2606 = vpow2.f32 %v1124_v31  ;;  %1399 = vmatprep.subr.mxu0 %v1354_v62  ;;  %1441 = vmatprep.mubr.f32.mxu0 %v2838_v54 }
 0x350   : > { %v3527_v33 = vpop.eup %2594  ;;  %v1126_v60 = vmul.f32 1.442695, %v1099_v23  ;;  %v1128_v26 = vmul.f32 1.442695, %v1100_v8  ;;  %1142 = vadd.xlane.f32.xlu1 %v3525_v47  ;;  %1400 = vmatpush1.msra.mxu0 %v1353_v7 }
 0x351   : > { %1144 = vadd.xlane.f32.xlu0 %v3527_v33  ;;  %v1083_v34 = vpop.xlane.xlu1 %1082  ;;  %v1085_v40 = vpop.xlane.xlu0 %1084  ;;  %1401 = vmatprep.subr.mxu0 %v1352_v51 }
 0x352   : > { %2608 = vpow2.f32 %v1126_v60  ;;  %v1101_v45 = vsub.f32 %v3480_v42, %v1083_v34  ;;  %v1102_v25 = vsub.f32 %v3488_v2, %v1085_v40  ;;  %1402 = vmatpush1.msra.mxu0 %v1351_v10 }
 0x353   : > { %v3533_v53 = vpop.eup %2596  ;;  %2610 = vpow2.f32 %v1128_v26  ;;  %1403 = vmatprep.subr.mxu0 %v1350_v15 }
 0x354   : > { %v3535_v50 = vpop.eup %2598  ;;  %v1130_v61 = vmul.f32 1.442695, %v1101_v45  ;;  %v1132_v5 = vmul.f32 1.442695, %v1102_v25  ;;  %1146 = vadd.xlane.f32.xlu1 %v3533_v53  ;;  %1404 = vmatpush1.msra.mxu0 %v1349_v41 }
 0x355   : > { %1148 = vadd.xlane.f32.xlu0 %v3535_v50  ;;  %v1087_v9 = vpop.xlane.xlu1 %1086  ;;  %1405 = vmatprep.subr.mxu0 %v1348_v27 }
 0x356   : > { %2612 = vpow2.f32 %v1130_v61  ;;  %v1103_v22 = vsub.f32 %v3486_v58, %v1087_v9  ;;  %1406 = vmatpush1.msra.mxu0 %v1347_v0 }
 0x357   : > { %v3540_v29 = vpop.eup %2600  ;;  %2614 = vpow2.f32 %v1132_v5  ;;  %1407 = vmatprep.subr.mxu0 %v1346_v30 }
 0x358   : > { %v3542_v42 = vpop.eup %2602  ;;  %v1134_v2 = vmul.f32 1.442695, %v1103_v22  ;;  %1150 = vadd.xlane.f32.xlu1 %v3540_v29  ;;  %1408 = vmatpush1.msra.mxu0 %v1345_v46 }
 0x359   : > { %1152 = vadd.xlane.f32.xlu0 %v3542_v42 }
 0x35a   : > { %2616 = vpow2.f32 %v1134_v2 }
 0x35b   : > { %v3546_v43 = vpop.eup %2604 }
 0x35c   : > { %v3548_v52 = vpop.eup %2606  ;;  %1154 = vadd.xlane.f32.xlu1 %v3546_v43 }
 0x35d   : > { %1156 = vadd.xlane.f32.xlu0 %v3548_v52 }
 0x35f   : > { %v3552_v58 = vpop.eup %2608 }
 0x360   : > { %v3554_v63 = vpop.eup %2610  ;;  %1158 = vadd.xlane.f32.xlu1 %v3552_v58 }
 0x361   : > { %1160 = vadd.xlane.f32.xlu0 %v3554_v63 }
 0x363   : > { %v3558_v16 = vpop.eup %2612 }
 0x364   : > { %v3560_v28 = vpop.eup %2614  ;;  %1162 = vadd.xlane.f32.xlu1 %v3558_v16 }
 0x365   : > { %1164 = vadd.xlane.f32.xlu0 %v3560_v28 }
 0x367   : > { %v3564_v44 = vpop.eup %2616 }
 0x368   : > { %1166 = vadd.xlane.f32.xlu1 %v3564_v44 }
 0x3d1   : > { %v1137_v17 = vpop.xlane.xlu0 %1136 }
 0x3d2   : > { %2618 = vrcp.f32 %v1137_v17 }
 0x3d5   : > { %v1139_v31 = vpop.xlane.xlu1 %1138 }
 0x3d6   : > { %2620 = vrcp.f32 %v1139_v31  ;;  %v1141_v32 = vpop.xlane.xlu0 %1140 }
 0x3d7   : > { %2622 = vrcp.f32 %v1141_v32 }
 0x3d9   : > { %v1143_v37 = vpop.xlane.xlu1 %1142 }
 0x3da   : > { %2624 = vrcp.f32 %v1143_v37  ;;  %v1145_v23 = vpop.xlane.xlu0 %1144 }
 0x3db   : > { %2626 = vrcp.f32 %v1145_v23 }
 0x3dd   : > { %v1147_v8 = vpop.xlane.xlu1 %1146 }
 0x3de   : > { %2628 = vrcp.f32 %v1147_v8  ;;  %v1149_v60 = vpop.xlane.xlu0 %1148 }
 0x3df   : > { %v2619_v26 = vpop.eup %2618  ;;  %2630 = vrcp.f32 %v1149_v60 }
 0x3e0   : > { %v1184_v34 = vmul.f32 %v2619_v26, %v3512_v6 }
 0x3e1   : > { %v1151_v40 = vpop.xlane.xlu1 %1150 }
 0x3e2   : > { %2632 = vrcp.f32 %v1151_v40  ;;  %v1153_v45 = vpop.xlane.xlu0 %1152  ;;  %2408 = vmatprep.mubr.f32.mxu1 %v1184_v34 }
 0x3e3   : > { %v2621_v25 = vpop.eup %2620  ;;  %2634 = vrcp.f32 %v1153_v45 }
 0x3e4   : > { %v2623_v61 = vpop.eup %2622  ;;  %v1185_v5 = vmul.f32 %v2621_v25, %v3517_v19 }
 0x3e5   : > { %v1155_v9 = vpop.xlane.xlu1 %1154  ;;  %v1186_v22 = vmul.f32 %v2623_v61, %v3519_v56 }
 0x3e6   : > { %2636 = vrcp.f32 %v1155_v9  ;;  %v1157_v2 = vpop.xlane.xlu0 %1156  ;;  %2409 = vmatmul.mubr.f32.vlgmr.msra.gmra.mxu1 %v1185_v5 }
 0x3e7   : > { %v2625_v57 = vpop.eup %2624  ;;  %2638 = vrcp.f32 %v1157_v2  ;;  %2411 = vmatprep.mubr.f32.mxu1 %v1186_v22 }
 0x3e8   : > { %v2627_v12 = vpop.eup %2626  ;;  %v1187_v6 = vmul.f32 %v2625_v57, %v3525_v47 }
 0x3e9   : > { %v1159_v38 = vpop.xlane.xlu1 %1158  ;;  %v1188_v49 = vmul.f32 %v2627_v12, %v3527_v33 }
 0x3ea   : > { %2640 = vrcp.f32 %v1159_v38  ;;  %v1161_v4 = vpop.xlane.xlu0 %1160  ;;  %2412 = vmatmul.mubr.f32.gmra.mxu1 %v1187_v6 }
 0x3eb   : > { %v2629_v21 = vpop.eup %2628  ;;  %2642 = vrcp.f32 %v1161_v4  ;;  %2414 = vmatprep.mubr.f32.mxu1 %v1188_v49 }
 0x3ec   : > { %v2631_v19 = vpop.eup %2630  ;;  %v1189_v56 = vmul.f32 %v2629_v21, %v3533_v53 }
 0x3ed   : > { %v1163_v48 = vpop.xlane.xlu1 %1162  ;;  %v1190_v18 = vmul.f32 %v2631_v19, %v3535_v50 }
 0x3ee   : > { %2644 = vrcp.f32 %v1163_v48  ;;  %v1165_v59 = vpop.xlane.xlu0 %1164  ;;  %2415 = vmatmul.mubr.f32.gmra.mxu1 %v1189_v56 }
 0x3ef   : > { %v2633_v3 = vpop.eup %2632  ;;  %2646 = vrcp.f32 %v1165_v59  ;;  %2417 = vmatprep.mubr.f32.mxu1 %v1190_v18 }
 0x3f0   : > { %v2635_v47 = vpop.eup %2634  ;;  %v1191_v33 = vmul.f32 %v2633_v3, %v3540_v29 }
 0x3f1   : > { %v1167_v11 = vpop.xlane.xlu1 %1166  ;;  %v1192_v55 = vmul.f32 %v2635_v47, %v3542_v42 }
 0x3f2   : > { %2648 = vrcp.f32 %v1167_v11  ;;  %2418 = vmatmul.mubr.f32.gmra.mxu1 %v1191_v33 }
 0x3f3   : > { %v2637_v24 = vpop.eup %2636  ;;  %2420 = vmatprep.mubr.f32.mxu1 %v1192_v55 }
 0x3f4   : > { %v2639_v53 = vpop.eup %2638  ;;  %v1193_v20 = vmul.f32 %v2637_v24, %v3546_v43 }
 0x3f5   : > { %v1194_v50 = vmul.f32 %v2639_v53, %v3548_v52 }
 0x3f6   : > { %2421 = vmatmul.mubr.f32.gmra.mxu1 %v1193_v20 }
 0x3f7   : > { %v2641_v35 = vpop.eup %2640  ;;  %2423 = vmatprep.mubr.f32.mxu1 %v1194_v50 }
 0x3f8   : > { %v2643_v13 = vpop.eup %2642  ;;  %v1195_v36 = vmul.f32 %v2641_v35, %v3552_v58 }
 0x3f9   : > { %v1196_v29 = vmul.f32 %v2643_v13, %v3554_v63 }
 0x3fa   : > { %2424 = vmatmul.mubr.f32.gmra.mxu1 %v1195_v36 }
 0x3fb   : > { %v2645_v42 = vpop.eup %2644  ;;  %2426 = vmatprep.mubr.f32.mxu1 %v1196_v29 }
 0x3fc   : > { %v2647_v39 = vpop.eup %2646  ;;  %v1197_v14 = vmul.f32 %v2645_v42, %v3558_v16 }
 0x3fd   : > { %v1198_v1 = vmul.f32 %v2647_v39, %v3560_v28 }
 0x3fe   : > { %2427 = vmatmul.mubr.f32.gmra.mxu1 %v1197_v14 }
 0x3ff   : > { %v2649_v43 = vpop.eup %2648  ;;  %2429 = vmatprep.mubr.f32.mxu1 %v1198_v1 }
 0x400   : > { %v1199_v52 = vmul.f32 %v2649_v43, %v3564_v44 }
 0x402   : > { %2430 = vmatmul.mubr.f32.gmra.mxu1 %v1199_v52 }
 0x4a6   : > { %v2410_v58 = vpop.f32.mrf.mxu1 }
 0x4a8   : > { %v1266_v63 = vpop.f32.mrf.mxu1 }
 0x4a9   : > { %1442 = vmatmul.mubr.f32.vlgmr.msra.gmra.mxu0 %v1266_v63 }
 0x4aa   : > { %1447 = vmatprep.mubr.f32.mxu0 %v2838_v54  ;;  %v2413_v62 = vpop.f32.mrf.mxu1 }
 0x4ac   : > { %v1276_v16 = vpop.f32.mrf.mxu1 }
 0x4ad   : > { %1448 = vmatmul.mubr.f32.gmra.mxu0 %v2410_v58 }
 0x4ae   : > { %1453 = vmatprep.mubr.f32.mxu0 %v2838_v54  ;;  %v2416_v28 = vpop.f32.mrf.mxu1 }
 0x4b0   : > { %v1286_v7 = vpop.f32.mrf.mxu1 }
 0x4b1   : > { %1454 = vmatmul.mubr.f32.gmra.mxu0 %v1276_v16 }
 0x4b2   : > { %1459 = vmatprep.mubr.f32.mxu0 %v2838_v54  ;;  %v2419_v44 = vpop.f32.mrf.mxu1 }
 0x4b4   : > { %v1296_v51 = vpop.f32.mrf.mxu1 }
 0x4b5   : > { %1460 = vmatmul.mubr.f32.gmra.mxu0 %v2413_v62 }
 0x4b6   : > { %1465 = vmatprep.mubr.f32.mxu0 %v2838_v54  ;;  %v2422_v10 = vpop.f32.mrf.mxu1 }
 0x4b8   : > { %v1306_v15 = vpop.f32.mrf.mxu1 }
 0x4b9   : > { %1466 = vmatmul.mubr.f32.gmra.mxu0 %v1286_v7 }
 0x4ba   : > { %1471 = vmatprep.mubr.f32.mxu0 %v2838_v54  ;;  %v2425_v41 = vpop.f32.mrf.mxu1 }
 0x4bc   : > { %v1316_v27 = vpop.f32.mrf.mxu1 }
 0x4bd   : > { %1472 = vmatmul.mubr.f32.gmra.mxu0 %v2416_v28 }
 0x4be   : > { %1477 = vmatprep.mubr.f32.mxu0 %v2838_v54  ;;  %v2428_v0 = vpop.f32.mrf.mxu1 }
 0x4c0   : > { %v1326_v30 = vpop.f32.mrf.mxu1 }
 0x4c1   : > { %1478 = vmatmul.mubr.f32.gmra.mxu0 %v1296_v51 }
 0x4c2   : > { %1483 = vmatprep.mubr.f32.mxu0 %v2838_v54  ;;  %v2431_v17 = vpop.f32.mrf.mxu1 }
 0x4c4   : > { %v1336_v31 = vpop.f32.mrf.mxu1 }
 0x4c5   : > { %1484 = vmatmul.mubr.f32.gmra.mxu0 %v2419_v44 }
 0x4c6   : > { %1489 = vmatprep.mubr.f32.mxu0 %v2838_v54 }
 0x4c9   : > { %1490 = vmatmul.mubr.f32.gmra.mxu0 %v1306_v15 }
 0x4ca   : > { %1495 = vmatprep.mubr.f32.mxu0 %v2838_v54 }
 0x4cd   : > { %1496 = vmatmul.mubr.f32.gmra.mxu0 %v2422_v10 }
 0x4ce   : > { %1501 = vmatprep.mubr.f32.mxu0 %v2838_v54 }
 0x4d1   : > { %1502 = vmatmul.mubr.f32.gmra.mxu0 %v1316_v27 }
 0x4d2   : > { %1507 = vmatprep.mubr.f32.mxu0 %v2838_v54 }
 0x4d5   : > { %1508 = vmatmul.mubr.f32.gmra.mxu0 %v2425_v41 }
 0x4d6   : > { %1513 = vmatprep.mubr.f32.mxu0 %v2838_v54 }
 0x4d9   : > { %1514 = vmatmul.mubr.f32.gmra.mxu0 %v1326_v30 }
 0x4da   : > { %1519 = vmatprep.mubr.f32.mxu0 %v2838_v54 }
 0x4dd   : > { %1520 = vmatmul.mubr.f32.gmra.mxu0 %v2428_v0 }
 0x4de   : > { %1525 = vmatprep.mubr.f32.mxu0 %v2838_v54 }
 0x4e1   : > { %1526 = vmatmul.mubr.f32.gmra.mxu0 %v1336_v31 }
 0x4e2   : > { %1531 = vmatprep.mubr.f32.mxu0 %v2838_v54 }
 0x4e5   : > { %1532 = vmatmul.mubr.f32.gmra.mxu0 %v2431_v17 }
 0x569   : > { %v3619_v32 = vpop.f32.mrf.mxu0 }
 0x56b   : > { %v3621_v37 = vpop.f32.mrf.mxu0 }
 0x56d   : > { %v3623_v23 = vpop.f32.mrf.mxu0 }
 0x56f   : > { %v3625_v8 = vpop.f32.mrf.mxu0 }
 0x571   : > { %v3627_v60 = vpop.f32.mrf.mxu0 }
 0x573   : > { %v3629_v26 = vpop.f32.mrf.mxu0 }
 0x575   : > { %v3631_v34 = vpop.f32.mrf.mxu0 }
 0x577   : > { %v3633_v40 = vpop.f32.mrf.mxu0 }
 0x579   : > { %v3635_v45 = vpop.f32.mrf.mxu0 }
 0x57b   : > { %v3637_v25 = vpop.f32.mrf.mxu0 }
 0x57d   : > { %v3639_v61 = vpop.f32.mrf.mxu0 }
 0x57f   : > { %v3641_v5 = vpop.f32.mrf.mxu0 }
 0x581   : > { %v3643_v9 = vpop.f32.mrf.mxu0 }
 0x583   : > { %v3645_v22 = vpop.f32.mrf.mxu0 }
 0x585   : > { %v3647_v2 = vpop.f32.mrf.mxu0 }
 0x587   : > { %v3649_v57 = vpop.f32.mrf.mxu0 }
 0x589   : > { %v3651_v12 = vpop.f32.mrf.mxu0 }
 0x58b   : > { %v3653_v6 = vpop.f32.mrf.mxu0 }
 0x58d   : > { %v3655_v38 = vpop.f32.mrf.mxu0 }
 0x58f   : > { %v3657_v49 = vpop.f32.mrf.mxu0 }
 0x591   : > { %v3659_v4 = vpop.f32.mrf.mxu0 }
 0x593   : > { %v3661_v21 = vpop.f32.mrf.mxu0 }
 0x595   : > { %v3663_v19 = vpop.f32.mrf.mxu0 }
 0x597   : > { %v3665_v56 = vpop.f32.mrf.mxu0 }
 0x599   : > { %v3667_v48 = vpop.f32.mrf.mxu0 }
 0x59b   : > { %v3669_v18 = vpop.f32.mrf.mxu0 }
 0x59d   : > { %v3671_v59 = vpop.f32.mrf.mxu0 }
 0x59f   : > { %v3673_v3 = vpop.f32.mrf.mxu0 }
 0x5a1   : > { %v3675_v47 = vpop.f32.mrf.mxu0 }
 0x5a3   : > { %v3677_v33 = vpop.f32.mrf.mxu0  ;;  %1541 = sbr.rel (%p2005_p7) target bundleno = 1465 (0x5b9), region = 52 }
 0x5a5   : > { %v3679_v11 = vpop.f32.mrf.mxu0 }
 0x5a7   : > { %v3681_v55 = vpop.f32.mrf.mxu0 }
 0x5a8   : > { %v2839_v24 = vmov 0.0  }
 0x5a9   : > { %1542 = vst [vmem:[#allocation2 + $0xb0] sm:$0xff] %v2839_v24  ;;  %1543 = vst [vmem:[#allocation2] sm:$0xff] %v2839_v24 }
 0x5aa   : > { %1544 = vst [vmem:[#allocation2 + $0xd8] sm:$0xff] %v2839_v24  ;;  %1545 = vst [vmem:[#allocation2 + $0x18] sm:$0xff] %v2839_v24 }
 0x5ab   : > { %1546 = vst [vmem:[#allocation2 + $0x50] sm:$0xff] %v2839_v24  ;;  %1547 = vst [vmem:[#allocation2 + $0x68] sm:$0xff] %v2839_v24 }
 0x5ac   : > { %1548 = vst [vmem:[#allocation2 + $0x30] sm:$0xff] %v2839_v24  ;;  %1549 = vst [vmem:[#allocation2 + $0x48] sm:$0xff] %v2839_v24 }
 0x5ad   : > { %1550 = vst [vmem:[#allocation2 + $0x80] sm:$0xff] %v2839_v24  ;;  %1551 = vst [vmem:[#allocation2 + $0x88] sm:$0xff] %v2839_v24 }
 0x5ae   : > { %1552 = vst [vmem:[#allocation2 + $0xe8] sm:$0xff] %v2839_v24  ;;  %1553 = vst [vmem:[#allocation2 + $0xb8] sm:$0xff] %v2839_v24 }
 0x5af   : > { %1554 = vst [vmem:[#allocation2 + $0x60] sm:$0xff] %v2839_v24  ;;  %1555 = vst [vmem:[#allocation2 + $0xf0] sm:$0xff] %v2839_v24 }
 0x5b0   : > { %1556 = vst [vmem:[#allocation2 + $0x8] sm:$0xff] %v2839_v24  ;;  %1557 = vst [vmem:[#allocation2 + $0x78] sm:$0xff] %v2839_v24 }
 0x5b1   : > { %1558 = vst [vmem:[#allocation2 + $0x38] sm:$0xff] %v2839_v24  ;;  %1559 = vst [vmem:[#allocation2 + $0x58] sm:$0xff] %v2839_v24 }
 0x5b2   : > { %1560 = vst [vmem:[#allocation2 + $0x40] sm:$0xff] %v2839_v24  ;;  %1561 = vst [vmem:[#allocation2 + $0xc8] sm:$0xff] %v2839_v24 }
 0x5b3   : > { %1562 = vst [vmem:[#allocation2 + $0xe0] sm:$0xff] %v2839_v24  ;;  %1563 = vst [vmem:[#allocation2 + $0x90] sm:$0xff] %v2839_v24 }
 0x5b4   : > { %1564 = vst [vmem:[#allocation2 + $0x70] sm:$0xff] %v2839_v24  ;;  %1565 = vst [vmem:[#allocation2 + $0xc0] sm:$0xff] %v2839_v24 }
 0x5b5   : > { %1566 = vst [vmem:[#allocation2 + $0xa8] sm:$0xff] %v2839_v24  ;;  %1567 = vst [vmem:[#allocation2 + $0xd0] sm:$0xff] %v2839_v24 }
 0x5b6   : > { %1568 = vst [vmem:[#allocation2 + $0x10] sm:$0xff] %v2839_v24  ;;  %1569 = vst [vmem:[#allocation2 + $0x28] sm:$0xff] %v2839_v24 }
 0x5b7   : > { %1570 = vst [vmem:[#allocation2 + $0xa0] sm:$0xff] %v2839_v24  ;;  %1571 = vst [vmem:[#allocation2 + $0xf8] sm:$0xff] %v2839_v24 }
 0x5b8   : > { %1572 = vst [vmem:[#allocation2 + $0x20] sm:$0xff] %v2839_v24  ;;  %1573 = vst [vmem:[#allocation2 + $0x98] sm:$0xff] %v2839_v24 }
 0x5b9 PF: > { %v1574_v53 = vld [vmem:[#allocation2 + $0xb0] sm:$0xff]  ;;  %v1575_v20 = vld [vmem:[#allocation2] sm:$0xff]  ;;  %v1576_v50 = vld [vmem:[#allocation2 + $0xd8] sm:$0xff]  ;;  %p2006_p12 = scmp.ne.s32.totalorder %s2810_s21, 1 }
 0x5ba   : > { %v1606_v35 = vadd.f32 %v1574_v53, %v3619_v32  ;;  %v1607_v13 = vadd.f32 %v1575_v20, %v3621_v37  ;;  %v1608_v36 = vadd.f32 %v1576_v50, %v3623_v23  ;;  %v1577_v29 = vld [vmem:[#allocation2 + $0x18] sm:$0xff]  ;;  %v1578_v42 = vld [vmem:[#allocation2 + $0x50] sm:$0xff]  ;;  %v1579_v39 = vld [vmem:[#allocation2 + $0x68] sm:$0xff] }
 0x5bb   : > { %v1609_v14 = vadd.f32 %v1577_v29, %v3625_v8  ;;  %v1610_v1 = vadd.f32 %v1578_v42, %v3627_v60  ;;  %v1611_v43 = vadd.f32 %v1579_v39, %v3629_v26  ;;  %v1580_v52 = vld [vmem:[#allocation2 + $0x30] sm:$0xff]  ;;  %v1581_v46 = vld [vmem:[#allocation2 + $0x48] sm:$0xff]  ;;  %v1582_v54 = vld [vmem:[#allocation2 + $0x80] sm:$0xff] }
 0x5bc   : > { %1638 = vst [vmem:[#allocation2 + $0xb0] sm:$0xff] %v1606_v35  ;;  %1639 = vst [vmem:[#allocation2] sm:$0xff] %v1607_v13  ;;  %v1612_v58 = vadd.f32 %v1580_v52, %v3631_v34  ;;  %v1613_v63 = vadd.f32 %v1581_v46, %v3633_v40  ;;  %v1614_v62 = vadd.f32 %v1582_v54, %v3635_v45  ;;  %v1583_v16 = vld [vmem:[#allocation2 + $0x88] sm:$0xff]  ;;  %v1585_v7 = vld [vmem:[#allocation2 + $0xb8] sm:$0xff] }
 0x5bd   : > { %1640 = vst [vmem:[#allocation2 + $0xd8] sm:$0xff] %v1608_v36  ;;  %v1584_v28 = vld [vmem:[#allocation2 + $0xe8] sm:$0xff]  ;;  %1641 = vst [vmem:[#allocation2 + $0x18] sm:$0xff] %v1609_v14  ;;  %v1615_v44 = vadd.f32 %v1583_v16, %v3637_v25  ;;  %v1617_v10 = vadd.f32 %v1585_v7, %v3641_v5  ;;  %v1586_v15 = vld [vmem:[#allocation2 + $0x60] sm:$0xff] }
 0x5be   : > { %1642 = vst [vmem:[#allocation2 + $0x50] sm:$0xff] %v1610_v1  ;;  %1643 = vst [vmem:[#allocation2 + $0x68] sm:$0xff] %v1611_v43  ;;  %v1616_v51 = vadd.f32 %v1584_v28, %v3639_v61  ;;  %v1587_v41 = vld [vmem:[#allocation2 + $0xf0] sm:$0xff]  ;;  %v1588_v27 = vld [vmem:[#allocation2 + $0x8] sm:$0xff]  ;;  %v1618_v0 = vadd.f32 %v1586_v15, %v3643_v9 }
 0x5bf   : > { %1644 = vst [vmem:[#allocation2 + $0x30] sm:$0xff] %v1612_v58  ;;  %1645 = vst [vmem:[#allocation2 + $0x48] sm:$0xff] %v1613_v63  ;;  %v1619_v30 = vadd.f32 %v1587_v41, %v3645_v22  ;;  %v1620_v17 = vadd.f32 %v1588_v27, %v3647_v2  ;;  %v1589_v31 = vld [vmem:[#allocation2 + $0x78] sm:$0xff]  ;;  %v1592_v26 = vld [vmem:[#allocation2 + $0x40] sm:$0xff] }
 0x5c0   : > { %1646 = vst [vmem:[#allocation2 + $0x80] sm:$0xff] %v1614_v62  ;;  %v1590_v32 = vld [vmem:[#allocation2 + $0x38] sm:$0xff]  ;;  %1647 = vst [vmem:[#allocation2 + $0x88] sm:$0xff] %v1615_v44  ;;  %v1621_v23 = vadd.f32 %v1589_v31, %v3649_v57  ;;  %v1593_v34 = vld [vmem:[#allocation2 + $0xc8] sm:$0xff]  ;;  %v1624_v45 = vadd.f32 %v1592_v26, %v3655_v38 }
 0x5c1   : > { %v1591_v37 = vld [vmem:[#allocation2 + $0x58] sm:$0xff]  ;;  %1648 = vst [vmem:[#allocation2 + $0xe8] sm:$0xff] %v1616_v51  ;;  %1649 = vst [vmem:[#allocation2 + $0xb8] sm:$0xff] %v1617_v10  ;;  %v1622_v8 = vadd.f32 %v1590_v32, %v3651_v12  ;;  %v1594_v40 = vld [vmem:[#allocation2 + $0xe0] sm:$0xff]  ;;  %v1625_v25 = vadd.f32 %v1593_v34, %v3657_v49 }
 0x5c2   : > { %v1623_v60 = vadd.f32 %v1591_v37, %v3653_v6  ;;  %1650 = vst [vmem:[#allocation2 + $0x60] sm:$0xff] %v1618_v0  ;;  %1651 = vst [vmem:[#allocation2 + $0xf0] sm:$0xff] %v1619_v30  ;;  %v1626_v61 = vadd.f32 %v1594_v40, %v3659_v4  ;;  %v1595_v5 = vld [vmem:[#allocation2 + $0x90] sm:$0xff]  ;;  %v1597_v22 = vld [vmem:[#allocation2 + $0xc0] sm:$0xff] }
 0x5c3   : > { %1652 = vst [vmem:[#allocation2 + $0x8] sm:$0xff] %v1620_v17  ;;  %v1596_v9 = vld [vmem:[#allocation2 + $0x70] sm:$0xff]  ;;  %1653 = vst [vmem:[#allocation2 + $0x78] sm:$0xff] %v1621_v23  ;;  %v1627_v2 = vadd.f32 %v1595_v5, %v3661_v21  ;;  %v1629_v12 = vadd.f32 %v1597_v22, %v3665_v56  ;;  %v1598_v6 = vld [vmem:[#allocation2 + $0xa8] sm:$0xff] }
 0x5c4   : > { %1654 = vst [vmem:[#allocation2 + $0x38] sm:$0xff] %v1622_v8  ;;  %1655 = vst [vmem:[#allocation2 + $0x58] sm:$0xff] %v1623_v60  ;;  %v1628_v57 = vadd.f32 %v1596_v9, %v3663_v19  ;;  %v1599_v24 = vld [vmem:[#allocation2 + $0xd0] sm:$0xff]  ;;  %v1630_v38 = vadd.f32 %v1598_v6, %v3667_v48  ;;  %v1601_v20 = vld [vmem:[#allocation2 + $0x28] sm:$0xff] }
 0x5c5   : > { %v1600_v53 = vld [vmem:[#allocation2 + $0x10] sm:$0xff]  ;;  %1656 = vst [vmem:[#allocation2 + $0x40] sm:$0xff] %v1624_v45  ;;  %1657 = vst [vmem:[#allocation2 + $0xc8] sm:$0xff] %v1625_v25  ;;  %v1631_v49 = vadd.f32 %v1599_v24, %v3669_v18  ;;  %v1602_v50 = vld [vmem:[#allocation2 + $0xa0] sm:$0xff]  ;;  %v1633_v21 = vadd.f32 %v1601_v20, %v3673_v3 }
 0x5c6   : > { %1658 = vst [vmem:[#allocation2 + $0xe0] sm:$0xff] %v1626_v61  ;;  %v1632_v4 = vadd.f32 %v1600_v53, %v3671_v59  ;;  %v1603_v35 = vld [vmem:[#allocation2 + $0xf8] sm:$0xff]  ;;  %1659 = vst [vmem:[#allocation2 + $0x90] sm:$0xff] %v1627_v2  ;;  %v1634_v19 = vadd.f32 %v1602_v50, %v3675_v47  ;;  %v1604_v13 = vld [vmem:[#allocation2 + $0x20] sm:$0xff] }
 0x5c7   : > { %1660 = vst [vmem:[#allocation2 + $0x70] sm:$0xff] %v1628_v57  ;;  %1661 = vst [vmem:[#allocation2 + $0xc0] sm:$0xff] %v1629_v12  ;;  %v1635_v56 = vadd.f32 %v1603_v35, %v3677_v33  ;;  %v1605_v36 = vld [vmem:[#allocation2 + $0x98] sm:$0xff]  ;;  %v1636_v48 = vadd.f32 %v1604_v13, %v3679_v11  ;;  %1673 = sbr.rel (%p2006_p12) target bundleno = 1510 (0x5e6), region = 56 }
 0x5c8   : > { %1662 = vst [vmem:[#allocation2 + $0xa8] sm:$0xff] %v1630_v38  ;;  %1663 = vst [vmem:[#allocation2 + $0xd0] sm:$0xff] %v1631_v49  ;;  %v1637_v18 = vadd.f32 %v1605_v36, %v3681_v55 }
 0x5c9   : > { %1664 = vst [vmem:[#allocation2 + $0x10] sm:$0xff] %v1632_v4  ;;  %1665 = vst [vmem:[#allocation2 + $0x28] sm:$0xff] %v1633_v21 }
 0x5ca   : > { %1666 = vst [vmem:[#allocation2 + $0xa0] sm:$0xff] %v1634_v19  ;;  %1667 = vst [vmem:[#allocation2 + $0xf8] sm:$0xff] %v1635_v56 }
 0x5cb   : > { %1668 = vst [vmem:[#allocation2 + $0x20] sm:$0xff] %v1636_v48  ;;  %1669 = vst [vmem:[#allocation2 + $0x98] sm:$0xff] %v1637_v18 }
 0x5cc   : > { %v1708_v59 = vlaneseq  ;;  %v1706_v3 = vld [vmem:[%s3864_s3] sm:$0x3]  ;;  %v1674_v33 = vld [vmem:[#allocation2 + $0xb0] sm:$0xff]  ;;  %v1676_v42 = vld [vmem:[#allocation2 + $0xd8] sm:$0xff] }
 0x5cd   : > { %v1675_v29 = vld [vmem:[#allocation2] sm:$0xff]  ;;  %v1677_v11 = vld [vmem:[#allocation2 + $0x18] sm:$0xff]  ;;  %v1678_v14 = vld [vmem:[#allocation2 + $0x50] sm:$0xff] }
 0x5ce   : > { %v1709_v47 = vshrl.u32 %v1708_v59, 7  ;;  %v1679_v1 = vld [vmem:[#allocation2 + $0x68] sm:$0xff]  ;;  %v1680_v43 = vld [vmem:[#allocation2 + $0x30] sm:$0xff]  ;;  %v1682_v46 = vld [vmem:[#allocation2 + $0x80] sm:$0xff] }
 0x5cf   : > { %v1681_v52 = vld [vmem:[#allocation2 + $0x48] sm:$0xff]  ;;  %v1685_v16 = vld [vmem:[#allocation2 + $0xb8] sm:$0xff]  ;;  %v1686_v28 = vld [vmem:[#allocation2 + $0x60] sm:$0xff] }
 0x5d0   : > { %v1710_v39 = vsub.s32 0, %v1709_v47  ;;  %v1714_v55 = vsub.s32 1, %v1709_v47  ;;  %v1683_v54 = vld [vmem:[#allocation2 + $0x88] sm:$0xff]  ;;  %v1687_v7 = vld [vmem:[#allocation2 + $0xf0] sm:$0xff]  ;;  %v1689_v51 = vld [vmem:[#allocation2 + $0x78] sm:$0xff] }
 0x5d1   : > { %v1684_v58 = vld [vmem:[#allocation2 + $0xe8] sm:$0xff]  ;;  %v1690_v10 = vld [vmem:[#allocation2 + $0x38] sm:$0xff]  ;;  %v1692_v17 = vld [vmem:[#allocation2 + $0x40] sm:$0xff] }
 0x5d2   : > { %v3724_v63 = vrot.slane %v1706_v3, %v1710_v39  ;;  %v3726_v62 = vrot.slane %v1706_v3, %v1714_v55  ;;  %v1688_v44 = vld [vmem:[#allocation2 + $0x8] sm:$0xff]  ;;  %v1691_v30 = vld [vmem:[#allocation2 + $0x58] sm:$0xff]  ;;  %v1694_v60 = vld [vmem:[#allocation2 + $0xe0] sm:$0xff] }
 0x5d3   : > { %v1693_v31 = vld [vmem:[#allocation2 + $0xc8] sm:$0xff]  ;;  %v1695_v26 = vld [vmem:[#allocation2 + $0x90] sm:$0xff]  ;;  %v1697_v5 = vld [vmem:[#allocation2 + $0xc0] sm:$0xff] }
 0x5d4   : > { %v1718_v15 = vadd.f32 %v3724_v63, %v1674_v33  ;;  %v1719_v41 = vadd.f32 %v3726_v62, %v1675_v29  ;;  %v1720_v27 = vadd.f32 %v3724_v63, %v1676_v42  ;;  %v1721_v0 = vadd.f32 %v3726_v62, %v1677_v11  ;;  %v1696_v34 = vld [vmem:[#allocation2 + $0x70] sm:$0xff]  ;;  %v1698_v9 = vld [vmem:[#allocation2 + $0xa8] sm:$0xff]  ;;  %v1702_v38 = vld [vmem:[#allocation2 + $0xa0] sm:$0xff] }
 0x5d5   : > { %v1722_v32 = vadd.f32 %v3724_v63, %v1678_v14  ;;  %v1723_v37 = vadd.f32 %v3726_v62, %v1679_v1  ;;  %v1724_v23 = vadd.f32 %v3724_v63, %v1680_v43  ;;  %v1725_v8 = vadd.f32 %v3726_v62, %v1681_v52  ;;  %v1699_v22 = vld [vmem:[#allocation2 + $0xd0] sm:$0xff]  ;;  %v1701_v53 = vld [vmem:[#allocation2 + $0x28] sm:$0xff]  ;;  %v1703_v35 = vld [vmem:[#allocation2 + $0xf8] sm:$0xff] }
 0x5d6   : > { %1750 = vst [vmem:[%s3685_s13] sm:$0xff] %v1718_v15  ;;  %1751 = vst [vmem:[%s3685_s13 + $0x8] sm:$0xff] %v1719_v41  ;;  %v1726_v40 = vadd.f32 %v3724_v63, %v1682_v46  ;;  %v1727_v45 = vadd.f32 %v3726_v62, %v1683_v54  ;;  %v1728_v25 = vadd.f32 %v3724_v63, %v1684_v58  ;;  %v1700_v24 = vld [vmem:[#allocation2 + $0x10] sm:$0xff]  ;;  %v1704_v21 = vld [vmem:[#allocation2 + $0x20] sm:$0xff] }
 0x5d7   : > { %1752 = vst [vmem:[%s3685_s13 + $0x10] sm:$0xff] %v1720_v27  ;;  %1753 = vst [vmem:[%s3685_s13 + $0x18] sm:$0xff] %v1721_v0  ;;  %v1729_v61 = vadd.f32 %v3726_v62, %v1685_v16  ;;  %v1730_v2 = vadd.f32 %v3724_v63, %v1686_v28  ;;  %v1731_v57 = vadd.f32 %v3726_v62, %v1687_v7  ;;  %v1705_v19 = vld [vmem:[#allocation2 + $0x98] sm:$0xff] }
 0x5d8   : > { %1754 = vst [vmem:[%s3685_s13 + $0x20] sm:$0xff] %v1722_v32  ;;  %1755 = vst [vmem:[%s3685_s13 + $0x28] sm:$0xff] %v1723_v37  ;;  %v1732_v12 = vadd.f32 %v3724_v63, %v1688_v44  ;;  %v1733_v6 = vadd.f32 %v3726_v62, %v1689_v51  ;;  %v1734_v49 = vadd.f32 %v3724_v63, %v1690_v10 }
 0x5d9   : > { %1756 = vst [vmem:[%s3685_s13 + $0x30] sm:$0xff] %v1724_v23  ;;  %1757 = vst [vmem:[%s3685_s13 + $0x38] sm:$0xff] %v1725_v8  ;;  %v1735_v4 = vadd.f32 %v3726_v62, %v1691_v30  ;;  %v1736_v20 = vadd.f32 %v3724_v63, %v1692_v17  ;;  %v1737_v50 = vadd.f32 %v3726_v62, %v1693_v31 }
 0x5da   : > { %1758 = vst [vmem:[%s3685_s13 + $0x40] sm:$0xff] %v1726_v40  ;;  %1759 = vst [vmem:[%s3685_s13 + $0x48] sm:$0xff] %v1727_v45  ;;  %v1738_v56 = vadd.f32 %v3724_v63, %v1694_v60  ;;  %v1739_v13 = vadd.f32 %v3726_v62, %v1695_v26  ;;  %v1740_v36 = vadd.f32 %v3724_v63, %v1696_v34 }
 0x5db   : > { %1760 = vst [vmem:[%s3685_s13 + $0x50] sm:$0xff] %v1728_v25  ;;  %1761 = vst [vmem:[%s3685_s13 + $0x58] sm:$0xff] %v1729_v61  ;;  %v1741_v48 = vadd.f32 %v3726_v62, %v1697_v5  ;;  %v1742_v18 = vadd.f32 %v3724_v63, %v1698_v9  ;;  %v1743_v59 = vadd.f32 %v3726_v62, %v1699_v22 }
 0x5dc   : > { %1762 = vst [vmem:[%s3685_s13 + $0x60] sm:$0xff] %v1730_v2  ;;  %1763 = vst [vmem:[%s3685_s13 + $0x68] sm:$0xff] %v1731_v57  ;;  %v1744_v3 = vadd.f32 %v3724_v63, %v1700_v24  ;;  %v1745_v47 = vadd.f32 %v3726_v62, %v1701_v53  ;;  %v1746_v33 = vadd.f32 %v3724_v63, %v1702_v38 }
 0x5dd   : > { %1764 = vst [vmem:[%s3685_s13 + $0x70] sm:$0xff] %v1732_v12  ;;  %1765 = vst [vmem:[%s3685_s13 + $0x78] sm:$0xff] %v1733_v6  ;;  %v1747_v29 = vadd.f32 %v3726_v62, %v1703_v35  ;;  %v1748_v42 = vadd.f32 %v3724_v63, %v1704_v21  ;;  %v1749_v11 = vadd.f32 %v3726_v62, %v1705_v19 }
 0x5de   : > { %1766 = vst [vmem:[%s3685_s13 + $0x80] sm:$0xff] %v1734_v49  ;;  %1767 = vst [vmem:[%s3685_s13 + $0x88] sm:$0xff] %v1735_v4 }
 0x5df   : > { %1768 = vst [vmem:[%s3685_s13 + $0x90] sm:$0xff] %v1736_v20  ;;  %1769 = vst [vmem:[%s3685_s13 + $0x98] sm:$0xff] %v1737_v50 }
 0x5e0   : > { %1770 = vst [vmem:[%s3685_s13 + $0xa0] sm:$0xff] %v1738_v56  ;;  %1771 = vst [vmem:[%s3685_s13 + $0xa8] sm:$0xff] %v1739_v13 }
 0x5e1   : > { %1772 = vst [vmem:[%s3685_s13 + $0xb0] sm:$0xff] %v1740_v36  ;;  %1773 = vst [vmem:[%s3685_s13 + $0xb8] sm:$0xff] %v1741_v48 }
 0x5e2   : > { %1774 = vst [vmem:[%s3685_s13 + $0xc0] sm:$0xff] %v1742_v18  ;;  %1775 = vst [vmem:[%s3685_s13 + $0xc8] sm:$0xff] %v1743_v59 }
 0x5e3   : > { %1776 = vst [vmem:[%s3685_s13 + $0xd0] sm:$0xff] %v1744_v3  ;;  %1777 = vst [vmem:[%s3685_s13 + $0xd8] sm:$0xff] %v1745_v47 }
 0x5e4   : > { %1778 = vst [vmem:[%s3685_s13 + $0xe0] sm:$0xff] %v1746_v33  ;;  %1779 = vst [vmem:[%s3685_s13 + $0xe8] sm:$0xff] %v1747_v29 }
 0x5e5   : > { %1780 = vst [vmem:[%s3685_s13 + $0xf0] sm:$0xff] %v1748_v42  ;;  %1781 = vst [vmem:[%s3685_s13 + $0xf8] sm:$0xff] %v1749_v11 }
 0x5e6 PF: > { %s2015_s29 = sshll.u32 %s2814_s22, 12  ;;  %s3923_s6 = sld [smem:[#allocation37_spill]] }
 0x5e7   : > { %s1796_s10 = sshll.u32 %s3685_s13, 4  ;;  %s1783_s4 = scalar_lea.sflag [#allocation5], %s3049_s24  ;;  %s3799_s10 = int_to_ptr.vmem [resolvable:$true] %s1796_s10 }
 0x5e8   : > { %s2702_s1 = scalar_lea.vmem %s3799_s10, 4096  ;;  %s2840_s18 = smov [#allocation9]  }
 0x5e9   : > { %p2703_p13 = scmp.ne.s32.totalorder %s3799_s10, %s2702_s1  ;;  %s2706_s20 = sshll.u32 %s2840_s18, 4  ;;  %s2707_s20 = int_to_ptr.vmem [resolvable:$false] %s2706_s20 }
 0x5ea   : > { %s2708_s22 = scalar_lea.vmem %s2707_s20, 8192  ;;  %p2709_p6 = scmp.lt.s32.totalorder %s3799_s10, %s2707_s20 }
 0x5eb   : > { %p2704_p2 = pnand %p2703_p13, %p2990_p4  ;;  %p2710_p9 = scmp.lt.s32.totalorder %s2708_s22, %s2702_s1 }
 0x5ec   : > { %s3796_s0 = scalar_lea.hbm %s3923_s6, %s2015_s29 }
 0x5ed   : > { %p2705_p1 = pneg %p2704_p2  ;;  %p2711_p11 = por %p2710_p9, %p2709_p6 }
 0x5ef   : > { %p2712_p0 = pnand %p2711_p11, %p2705_p1 }
 0x5f1   : > { %2715 = shalt.err (!%p2712_p0)
}
 0x5f2   : > { %s2716_s12 = scalar_lea.hbm %s3796_s0, 4096  ;;  %s2720_s7 = scalar_lea.hbm %s3923_s6, 8192 }
 0x5f3   : > { %p2717_p5 = scmp.ne.s32.totalorder %s3796_s0, %s2716_s12  ;;  %p2721_p7 = scmp.lt.s32.totalorder %s3796_s0, %s3923_s6 }
 0x5f4   : > { %p2722_p12 = scmp.lt.s32.totalorder %s2720_s7, %s2716_s12 }
 0x5f5   : > { %p2718_p8 = pnand %p2717_p5, %p2990_p4 }
 0x5f6   : > { %p2723_p13 = por %p2722_p12, %p2721_p7 }
 0x5f7   : > { %p2719_p3 = pneg %p2718_p8 }
 0x5f9   : > { %p2724_p2 = pnand %p2723_p13, %p2719_p3 }
 0x5fb   : > { %2727 = shalt.err (!%p2724_p2)
}
 0x5fc   : > { %s2841_s30 = smov 256   ;;  %s2842_s26 = smov 16  }
 0x5fd   : > { %2479 = dma.vmem_to_hbm [thread:$0]  (%p2990_p4), %s3799_s10, 4096, %s3796_s0, %s1783_s4, %s2841_s30, %s2841_s30, %s2842_s26  }
 0x5fe PF: > { %s3924_s8 = sld [smem:[#allocation16_spill]]  ;;  %p2485_p1 = scmp.ge.s32.totalorder %s2826_s25, 2 }
 0x600   : > { %p2482_p6 = pnand %p2485_p1, %p2997_p10 }
 0x602   : > { %p2483_p9 = pneg %p2482_p6 }
 0x604   : > { %s1811_s15 = sand.u32 1, %s3924_s8  }
 0x605   : > { %s1812_s28 = scalar_lea.sflag [#allocation5], %s1811_s15 }
 0x606   : > { %2781 = dma.done.wait (%p2483_p9), %s1812_s28, 4096  }
 0x607   : > { %2783 = vsyncadd (%p2483_p9), %s1812_s28, 4294963200  ;;  %s23_s25 = sadd.s32 1, %s2826_s25   ;;  %s3926_s21 = sld [smem:[#allocation22_spill]] }
 0x608   : > { %p20_p11 = scmp.ge.s32.totalorder %s23_s25, 6   ;;  %s3927_s24 = sld [smem:[#allocation17_spill]] }
 0x609   : > { %s3928_s20 = sld [smem:[#allocation23_spill]]  ;;  %s3933_s15 = smov %s2790_s16 }
 0x60a   : > { %s3929_s29 = sld [smem:[#allocation18_spill]]  ;;  %s3934_s16 = smov %s2794_s17 }
 0x60b   : > { %s3930_s22 = sld [smem:[#allocation19_spill]]  ;;  %s3936_s18 = smov %s2802_s19 }
 0x60c   : > { %s3931_s23 = sld [smem:[#allocation20_spill]] }
 0x60d   : > { %s3932_s11 = sld [smem:[#allocation21_spill]]  ;;  %s3935_s17 = smov %s3926_s21 }
 0x60e   : > { %s3937_s19 = smov %s3927_s24 }
 0x60f   :  { %22 = sbr.rel (!%p20_p11) target bundleno = 15 (0xf), region = 120 }
 0x610   : > { %s3938_s21 = smov %s3929_s29 }
 0x613   : > { %s3939_s24 = smov %s3932_s11 }
 0x614   :  { %1817 = vsyncpa [#allocation4], 1 }
 0x615   :  { %1819 = vsyncpa [#allocation4 + $0x1], 1 }
 0x616   :  { %1820 = vsyncpa [#allocation7], 1 }
 0x617   :  { %1822 = vsyncpa [#allocation7 + $0x1], 1 }
 0x618   :  { %1823 = vsyncpa [#allocation5], 1 }
 0x619   :  { %1825 = vsyncpa [#allocation5 + $0x1], 1 }

</bundles_post_ra>
